<compile_context>
chip_gen: v7x
topology: tpu7x:2x2x1
jax: 0.10.0
libtpu: 0.0.40
codegen_flags: <defaults>
</compile_context>

<pallas_src>
from functools import partial

import numpy as np
import jax
import jax.numpy as jnp
from jax.experimental import pallas as pl
from jax.experimental.pallas import tpu as pltpu


# ----------------------------- tiling helpers -------------------------------

_VMEM_LIMIT_BYTES = 48 * 1024 * 1024      # explicit: above 16/32MiB scoped
                                          # defaults, below v7x 64MiB physical.

def _cparams(dims):
    return pltpu.CompilerParams(dimension_semantics=dims,
                                vmem_limit_bytes=_VMEM_LIMIT_BYTES)


def _round_up(x, m):
    return ((x + m - 1) // m) * m


def _pick_tile(dim, target, align):
    """Largest t <= target with dim % t == 0 and t % align == 0, else full dim."""
    if dim <= target:
        return dim
    t = (min(target, dim) // align) * align
    while t >= align:
        if dim % t == 0:
            return t
        t -= align
    return dim   # TODO(synk): ragged seq lens fall back to one full-length tile.


def _choose_tile(dim, target, align):
    """Aligned tile size; caller zero-pads dim up to a multiple of it."""
    if dim <= target:
        return _round_up(dim, align)
    t = (target // align) * align
    c = t
    while c >= align:
        if dim % c == 0:
            return c
        c -= align
    return t     # no divisor: caller pads (fixes the full-dim VMEM blowout).


def _pad2(a, rows, cols):
    pr, pc = rows - a.shape[0], cols - a.shape[1]
    if pr == 0 and pc == 0:
        return a
    return jnp.pad(a, ((0, pr), (0, pc)))


# --------------------------- tiled matmul kernels ----------------------------

def _mm_kernel(x_ref, w_ref, b_ref, o_ref, acc_ref):
    @pl.when(pl.program_id(2) == 0)
    def _init():
        acc_ref[...] = jnp.zeros_like(acc_ref)

    acc_ref[...] += jnp.dot(x_ref[...], w_ref[...],
                            preferred_element_type=jnp.float32)

    @pl.when(pl.program_id(2) == pl.num_programs(2) - 1)
    def _fin():
        o_ref[...] = (acc_ref[...] + b_ref[...]).astype(o_ref.dtype)


def _mm_res_kernel(x_ref, w_ref, b_ref, r_ref, o_ref, acc_ref):
    @pl.when(pl.program_id(2) == 0)
    def _init():
        acc_ref[...] = jnp.zeros_like(acc_ref)

    acc_ref[...] += jnp.dot(x_ref[...], w_ref[...],
                            preferred_element_type=jnp.float32)

    @pl.when(pl.program_id(2) == pl.num_programs(2) - 1)
    def _fin():
        o_ref[...] = (acc_ref[...] + b_ref[...] +
                      r_ref[...].astype(jnp.float32)).astype(o_ref.dtype)


def pallas_matmul(x, w, b=None, residual=None, out_dtype=jnp.bfloat16,
                  tm=512, tn=256, tk=512):
    """out = x @ w + b (+ residual).  bf16 MXU inputs, f32 accumulation."""
    M, K = x.shape
    N = w.shape[1]
    tm = _choose_tile(M, tm, 8)
    tn = _choose_tile(N, tn, 128)
    tk = _choose_tile(K, tk, 128)
    Mp, Np, Kp = _round_up(M, tm), _round_up(N, tn), _round_up(K, tk)

    xp = _pad2(x.astype(jnp.bfloat16), Mp, Kp)
    wp = _pad2(w.astype(jnp.bfloat16), Kp, Np)
    if b is None:
        b2 = jnp.zeros((1, Np), jnp.float32)
    else:
        b2 = _pad2(b.astype(jnp.float32).reshape(1, N), 1, Np)

    grid = (Mp // tm, Np // tn, Kp // tk)
    in_specs = [
        pl.BlockSpec((tm, tk), lambda i, j, k: (i, k)),
        pl.BlockSpec((tk, tn), lambda i, j, k: (k, j)),
        pl.BlockSpec((1, tn), lambda i, j, k: (0, j)),
    ]
    args = [xp, wp, b2]
    kernel = _mm_kernel
    if residual is not None:
        in_specs.append(pl.BlockSpec((tm, tn), lambda i, j, k: (i, j)))
        args.append(_pad2(residual.astype(jnp.bfloat16), Mp, Np))
        kernel = _mm_res_kernel

    cost = pl.CostEstimate(flops=2 * M * N * K, transcendentals=0,
                           bytes_accessed=(M * K + K * N + M * N) * 2)

    out = pl.pallas_call(
        kernel,
        out_shape=jax.ShapeDtypeStruct((Mp, Np), out_dtype),
        grid=grid,
        in_specs=in_specs,
        out_specs=pl.BlockSpec((tm, tn), lambda i, j, k: (i, j)),
        scratch_shapes=[pltpu.VMEM((tm, tn), jnp.float32)],
        compiler_params=_cparams(("parallel", "parallel", "arbitrary")),
        cost_estimate=cost,
    )(*args)
    if Mp != M or Np != N:
        out = out[:M, :N]
    return out


# ---------------------- fused RMSNorm + projection kernels -------------------

def _norm_mm_kernel(x_ref, g_ref, w_ref, b_ref, o_ref, xn_ref, *, eps):
    # RMSNorm computed once per row tile (j == 0) and cached in bf16 scratch.
    @pl.when(pl.program_id(1) == 0)
    def _norm():
        x = x_ref[...].astype(jnp.float32)
        var = jnp.mean(x * x, axis=-1, keepdims=True)
        xn_ref[...] = (x * jax.lax.rsqrt(var + eps) * g_ref[...]).astype(jnp.bfloat16)

    y = jnp.dot(xn_ref[...], w_ref[...],
                preferred_element_type=jnp.float32) + b_ref[...]
    o_ref[...] = y.astype(o_ref.dtype)


def pallas_norm_linear(x, g, w, b, eps, out_dtype=jnp.bfloat16, tm=512, tn=256):
    """RMSNorm(x) @ w + b, norm fused into the matmul (full-K blocks)."""
    M, K = x.shape
    N = w.shape[1]
    tm = _choose_tile(M, tm, 8)
    tn = _choose_tile(N, tn, 128)
    Mp, Np = _round_up(M, tm), _round_up(N, tn)

    xp = _pad2(x.astype(jnp.bfloat16), Mp, K)
    wp = _pad2(w.astype(jnp.bfloat16), K, Np)
    b2 = _pad2(b.astype(jnp.float32).reshape(1, N), 1, Np)
    g2 = g.astype(jnp.float32).reshape(1, K)

    cost = pl.CostEstimate(flops=2 * M * K * N, transcendentals=M,
                           bytes_accessed=(M * K + K * N + M * N) * 2)
    out = pl.pallas_call(
        partial(_norm_mm_kernel, eps=eps),
        out_shape=jax.ShapeDtypeStruct((Mp, Np), out_dtype),
        grid=(Mp // tm, Np // tn),
        in_specs=[
            pl.BlockSpec((tm, K), lambda i, j: (i, 0)),
            pl.BlockSpec((1, K), lambda i, j: (0, 0)),
            pl.BlockSpec((K, tn), lambda i, j: (0, j)),
            pl.BlockSpec((1, tn), lambda i, j: (0, j)),
        ],
        out_specs=pl.BlockSpec((tm, tn), lambda i, j: (i, j)),
        scratch_shapes=[pltpu.VMEM((tm, K), jnp.bfloat16)],
        compiler_params=_cparams(("parallel", "arbitrary")),
        cost_estimate=cost,
    )(xp, g2, wp, b2)
    if Mp != M or Np != N:
        out = out[:M, :N]
    return out


def _norm_glu_kernel(x_ref, g_ref, wg_ref, bg_ref, wu_ref, bu_ref, o_ref,
                     xn_ref, *, eps):
    @pl.when(pl.program_id(1) == 0)
    def _norm():
        x = x_ref[...].astype(jnp.float32)
        var = jnp.mean(x * x, axis=-1, keepdims=True)
        xn_ref[...] = (x * jax.lax.rsqrt(var + eps) * g_ref[...]).astype(jnp.bfloat16)

    xn = xn_ref[...]
    gt = jnp.dot(xn, wg_ref[...], preferred_element_type=jnp.float32) + bg_ref[...]
    up = jnp.dot(xn, wu_ref[...], preferred_element_type=jnp.float32) + bu_ref[...]
    sig = 1.0 / (1.0 + jnp.exp(-gt))
    o_ref[...] = (gt * sig * up).astype(o_ref.dtype)        # SiLU(gate) * up


def pallas_norm_glu(x, g, wg, bg, wu, bu, eps, out_dtype=jnp.bfloat16,
                    tm=512, tn=256):
    """SiLU(RMSNorm(x) @ wg + bg) * (RMSNorm(x) @ wu + bu), fully fused."""
    M, K = x.shape
    N = wg.shape[1]
    tm = _choose_tile(M, tm, 8)
    tn = _choose_tile(N, tn, 128)
    Mp, Np = _round_up(M, tm), _round_up(N, tn)

    xp = _pad2(x.astype(jnp.bfloat16), Mp, K)
    wgp = _pad2(wg.astype(jnp.bfloat16), K, Np)
    wup = _pad2(wu.astype(jnp.bfloat16), K, Np)
    bgp = _pad2(bg.astype(jnp.float32).reshape(1, N), 1, Np)
    bup = _pad2(bu.astype(jnp.float32).reshape(1, N), 1, Np)
    g2 = g.astype(jnp.float32).reshape(1, K)

    cost = pl.CostEstimate(flops=4 * M * K * N, transcendentals=M * N,
                           bytes_accessed=(M * K + 2 * K * N + M * N) * 2)
    out = pl.pallas_call(
        partial(_norm_glu_kernel, eps=eps),
        out_shape=jax.ShapeDtypeStruct((Mp, Np), out_dtype),
        grid=(Mp // tm, Np // tn),
        in_specs=[
            pl.BlockSpec((tm, K), lambda i, j: (i, 0)),
            pl.BlockSpec((1, K), lambda i, j: (0, 0)),
            pl.BlockSpec((K, tn), lambda i, j: (0, j)),
            pl.BlockSpec((1, tn), lambda i, j: (0, j)),
            pl.BlockSpec((K, tn), lambda i, j: (0, j)),
            pl.BlockSpec((1, tn), lambda i, j: (0, j)),
        ],
        out_specs=pl.BlockSpec((tm, tn), lambda i, j: (i, j)),
        scratch_shapes=[pltpu.VMEM((tm, K), jnp.bfloat16)],
        compiler_params=_cparams(("parallel", "arbitrary")),
        cost_estimate=cost,
    )(xp, g2, wgp, bgp, wup, bup)
    if Mp != M or Np != N:
        out = out[:M, :N]
    return out


def _rmsnorm_kernel(x_ref, g_ref, o_ref, *, eps):
    x = x_ref[...].astype(jnp.float32)
    var = jnp.mean(x * x, axis=-1, keepdims=True)
    o_ref[...] = (x * jax.lax.rsqrt(var + eps) * g_ref[...]).astype(o_ref.dtype)


def pallas_rmsnorm(x, g, eps, tm=512, out_dtype=jnp.bfloat16):
    M, K = x.shape
    tm = _choose_tile(M, tm, 8)
    Mp = _round_up(M, tm)
    xp = _pad2(x.astype(jnp.bfloat16), Mp, K)
    out = pl.pallas_call(
        partial(_rmsnorm_kernel, eps=eps),
        out_shape=jax.ShapeDtypeStruct((Mp, K), out_dtype),
        grid=(Mp // tm,),
        in_specs=[pl.BlockSpec((tm, K), lambda i: (i, 0)),
                  pl.BlockSpec((1, K), lambda i: (0, 0))],
        out_specs=pl.BlockSpec((tm, K), lambda i: (i, 0)),
        compiler_params=_cparams(("parallel",)),
    )(xp, g.astype(jnp.float32).reshape(1, K))
    return out[:M] if Mp != M else out


# --------------------- RoPE + head split pre-pass (O(S)) ---------------------

def _rope_split_kernel(qkv_ref, cos_ref, sin_ref, q_ref, k_ref, v_ref,
                       *, num_heads, head_dim, hidden, scale):
    D = head_dim
    cos = cos_ref[...]                                    # (t, D) f32
    sin = sin_ref[...]                                    # (t, D) f32

    def rot_half(x):                                      # [-x2, x1]
        return jnp.concatenate([-x[:, D // 2:], x[:, :D // 2]], axis=-1)

    # O(S) pre-pass: the per-head loop here runs once per token tile, not in
    # the O(S^2) attention loop.  The softmax scale is baked into Q.
    for h in range(num_heads):
        qh = qkv_ref[:, h * D:(h + 1) * D].astype(jnp.float32)
        kh = qkv_ref[:, hidden + h * D: hidden + (h + 1) * D].astype(jnp.float32)
        q_ref[h] = ((qh * cos + rot_half(qh) * sin) * scale).astype(q_ref.dtype)
        k_ref[h] = (kh * cos + rot_half(kh) * sin).astype(k_ref.dtype)
        v_ref[h] = qkv_ref[:, 2 * hidden + h * D: 2 * hidden + (h + 1) * D]


def pallas_rope_split(qkv, cos, sin, num_heads, head_dim, scale, seq_tile=256):
    """(S, 3*hidden) QKV -> rotated Q, rotated K, V, each (H, S, D) bf16."""
    S = qkv.shape[0]
    hidden = num_heads * head_dim
    t = _pick_tile(S, seq_tile, 128)
    shape = jax.ShapeDtypeStruct((num_heads, S, head_dim), jnp.bfloat16)
    kernel = partial(_rope_split_kernel, num_heads=num_heads, head_dim=head_dim,
                     hidden=hidden, scale=scale)
    return pl.pallas_call(
        kernel,
        out_shape=(shape, shape, shape),
        grid=(S // t,),
        in_specs=[pl.BlockSpec((t, 3 * hidden), lambda i: (i, 0)),
                  pl.BlockSpec((t, head_dim), lambda i: (i, 0)),
                  pl.BlockSpec((t, head_dim), lambda i: (i, 0))],
        out_specs=(pl.BlockSpec((num_heads, t, head_dim), lambda i: (0, i, 0)),
                   pl.BlockSpec((num_heads, t, head_dim), lambda i: (0, i, 0)),
                   pl.BlockSpec((num_heads, t, head_dim), lambda i: (0, i, 0))),
        compiler_params=_cparams(("parallel",)),
    )(qkv, cos, sin)


# ------------------------- flash attention (segmented) -----------------------

_NEG_MASK = -1e30    # additive mask bias for cross-segment positions
_M_INIT = -1e9       # running-max floor: keeps exp(mask - m) == 0 for rows
                     # that are fully masked in a tile (no maskf multiply).


def _kv_block(ki, qi, kvs_ref, kve_ref):
    # Clamp the kv block index into this q tile's live range; skipped grid
    # steps then revisit the previous block so their K/V DMA is elided.
    return jnp.minimum(jnp.maximum(ki, kvs_ref[qi]), kve_ref[qi] - 1)


def _flash_attn_kernel(kvs_ref, kve_ref, segq_ref, segk_ref, q_ref, k_ref,
                       v_ref, o_ref, m_sc, l_sc, acc_sc,
                       *, num_heads, head_dim):
    qi = pl.program_id(0)
    ki = pl.program_id(1)
    D = head_dim

    @pl.when(ki == 0)
    def _init():
        m_sc[...] = jnp.full(m_sc.shape, _M_INIT, jnp.float32)
        l_sc[...] = jnp.zeros_like(l_sc)
        acc_sc[...] = jnp.zeros_like(acc_sc)

    # Skip (qi, ki) tiles entirely outside this q tile's kv range (windowed
    # layers): no MXU/VPU work, and the clamped index_map elides the DMA.
    overlap = jnp.logical_and(ki >= kvs_ref[qi], ki < kve_ref[qi])

    @pl.when(overlap)
    def _compute():
        # Additive block-diagonal mask bias from per-token segment ids, built
        # once per tile (no dense (S,S) mask in HBM, no per-head where/mul).
        bias = jnp.where(segq_ref[...] == segk_ref[...], 0.0, _NEG_MASK)

        q = q_ref[...]                                    # (H, tq, D) bf16, RoPE + scale applied
        k = k_ref[...]                                    # (H, tk, D) bf16, RoPE applied
        v = v_ref[...]                                    # (H, tk, D) bf16

        s = jax.lax.dot_general(q, k, (((2,), (2,)), ((0,), (0,))),
                                preferred_element_type=jnp.float32)  # (H,tq,tk)
        s = s + bias[None, :, :]

        m_prev = m_sc[...]                                # (H, tq, 1)
        m_new = jnp.maximum(m_prev, s.max(axis=-1, keepdims=True))
        alpha = jnp.exp(m_prev - m_new)
        p = jnp.exp(s - m_new)
        l_sc[...] = alpha * l_sc[...] + p.sum(axis=-1, keepdims=True)
        acc_sc[...] = alpha * acc_sc[...] + jax.lax.dot_general(
            p.astype(jnp.bfloat16), v, (((2,), (1,)), ((0,), (0,))),
            preferred_element_type=jnp.float32)
        m_sc[...] = m_new

    @pl.when(ki == pl.num_programs(1) - 1)
    def _fin():
        inv = 1.0 / l_sc[...]                             # exact; (H, tq, 1)
        # lane-dense (tq, hidden) output; per-head writes only in the finalize.
        for h in range(num_heads):
            o_ref[:, h * D:(h + 1) * D] = (acc_sc[h] * inv[h]).astype(o_ref.dtype)


def pallas_flash_attention(q, k, v, seg_col, seg_row, kv_start, kv_end, *,
                           tile, out_dtype=jnp.bfloat16):
    """q,k,v: (H, S, D) bf16 (RoPE + scale already applied) -> (S, hidden)."""
    H, S, D = q.shape
    hidden = H * D
    t = tile
    nq = S // t

    kernel = partial(_flash_attn_kernel, num_heads=H, head_dim=D)
    grid_spec = pltpu.PrefetchScalarGridSpec(
        num_scalar_prefetch=2,
        grid=(nq, nq),
        in_specs=[
            pl.BlockSpec((t, 1), lambda qi, ki, kvs, kve: (qi, 0)),
            pl.BlockSpec((1, t),
                         lambda qi, ki, kvs, kve: (0, _kv_block(ki, qi, kvs, kve))),
            pl.BlockSpec((H, t, D), lambda qi, ki, kvs, kve: (0, qi, 0)),
            pl.BlockSpec((H, t, D),
                         lambda qi, ki, kvs, kve: (0, _kv_block(ki, qi, kvs, kve), 0)),
            pl.BlockSpec((H, t, D),
                         lambda qi, ki, kvs, kve: (0, _kv_block(ki, qi, kvs, kve), 0)),
        ],
        out_specs=pl.BlockSpec((t, hidden), lambda qi, ki, kvs, kve: (qi, 0)),
        scratch_shapes=[pltpu.VMEM((H, t, 1), jnp.float32),
                        pltpu.VMEM((H, t, 1), jnp.float32),
                        pltpu.VMEM((H, t, D), jnp.float32)],
    )
    cost = pl.CostEstimate(flops=4 * S * S * hidden,
                           transcendentals=H * S * S,
                           bytes_accessed=2 * hidden * S * (2 * nq + 2))
    return pl.pallas_call(
        kernel,
        out_shape=jax.ShapeDtypeStruct((S, hidden), out_dtype),
        grid_spec=grid_spec,
        compiler_params=_cparams(("parallel", "arbitrary")),
        cost_estimate=cost,
    )(kv_start, kv_end, seg_col, seg_row, q, k, v)


# -------------------- host-side index / rope bookkeeping --------------------

def rotary_pos_emb_thw_np(t, h, w, head_dim, sms, theta=10000.0):
    dim = head_dim // 2
    inv_freq = 1.0 / theta ** (np.arange(0, dim, 2, dtype=np.float32) / dim)
    max_size = max(h, w)
    freqs_full = np.outer(np.arange(max_size, dtype=np.float32), inv_freq)
    hpos = np.broadcast_to(np.arange(h)[:, None], (h, w))
    wpos = np.broadcast_to(np.arange(w)[None, :], (h, w))
    hpos = hpos.reshape(h // sms, sms, w // sms, sms).transpose(0, 2, 1, 3).reshape(-1)
    wpos = wpos.reshape(h // sms, sms, w // sms, sms).transpose(0, 2, 1, 3).reshape(-1)
    pos_ids = np.stack([hpos, wpos], axis=-1)
    pos_ids = np.tile(pos_ids, (t, 1))
    rpe = freqs_full[pos_ids]                       # (t*h*w, 2, dim//2)
    rpe = rpe.reshape(rpe.shape[0], -1)             # (t*h*w, head_dim//2)
    smu = sms * sms
    return rpe.reshape(rpe.shape[0] // smu, smu, -1)


def get_window_index_thw(grid_t, grid_h, grid_w, window_size, sms, patch_size):
    vws = window_size // sms // patch_size
    llm_h = grid_h // sms
    llm_w = grid_w // sms
    index = np.arange(grid_t * llm_h * llm_w).reshape(grid_t, llm_h, llm_w)
    pad_h = vws - llm_h % vws
    pad_w = vws - llm_w % vws
    num_h = (llm_h + pad_h) // vws
    num_w = (llm_w + pad_w) // vws
    index_padded = np.pad(index, ((0, 0), (0, pad_h), (0, pad_w)),
                          constant_values=-100)
    index_padded = index_padded.reshape(grid_t, num_h, vws, num_w, vws)
    index_padded = index_padded.transpose(0, 1, 3, 2, 4).reshape(
        grid_t, num_h * num_w, vws, vws)
    seqlens = (index_padded != -100).sum(axis=(2, 3)).reshape(-1)
    index_padded = index_padded.reshape(-1)
    index_new = index_padded[index_padded != -100]
    cu = (np.cumsum(seqlens) * (sms * sms)).astype(np.int64)
    cu = cu[np.concatenate(([True], cu[1:] != cu[:-1]))]  # unique_consecutive
    return index_new, cu


def seg_ids_from_cu(cu, seq_len):
    cu = np.asarray(cu, np.int64)
    seg = np.repeat(np.arange(len(cu) - 1), np.diff(cu)).astype(np.int32)
    assert seg.shape[0] == seq_len
    return seg


def kv_tile_ranges(cu, seq_len, tile):
    """Per-q-tile [start, end) kv *block* range implied by cu_seqlens."""
    cu = np.asarray(cu, np.int64)
    seg = seg_ids_from_cu(cu, seq_len)
    nq = seq_len // tile
    starts = np.zeros((nq,), np.int32)
    ends = np.zeros((nq,), np.int32)
    for qi in range(nq):
        s_lo = int(seg[qi * tile])
        s_hi = int(seg[(qi + 1) * tile - 1])
        starts[qi] = int(cu[s_lo]) // tile
        ends[qi] = -(-int(cu[s_hi + 1]) // tile)
    return jnp.asarray(starts), jnp.asarray(ends)


# ----------------------------- model forward --------------------------------

def vision_transformer_forward(params, x, grid_thw, cfg):
    sms = cfg['spatial_merge_size']
    smu = sms * sms
    hidden = cfg['hidden_size']
    num_heads = cfg['num_heads']
    head_dim = hidden // num_heads
    seq_len = x.shape[0]
    eps = cfg['norm_eps']

    # ---- host-side static bookkeeping (window order, cu_seqlens, rotary) ----
    rotary_list, window_index_list = [], []
    cu_window_list = [np.array([0], np.int64)]
    cu_full_list = []
    window_index_id = 0
    cu_window_last = 0
    for (t, h, w) in grid_thw:
        t, h, w = int(t), int(h), int(w)
        llm_h, llm_w = h // sms, w // sms
        widx, cu_win = get_window_index_thw(
            t, h, w, cfg['window_size'], sms, cfg['patch_size'])
        rpe = rotary_pos_emb_thw_np(t, h, w, head_dim, sms)
        rpe = rpe[widx].reshape(-1, rpe.shape[-1])
        rotary_list.append(rpe)
        window_index_list.append(widx + window_index_id)
        window_index_id += t * llm_h * llm_w
        cu_win = cu_win + cu_window_last
        cu_window_last = int(cu_win[-1])
        cu_window_list.append(cu_win)
        cu_full_list.append(np.full((t,), h * w, np.int64))

    rotary = np.concatenate(rotary_list, axis=0)                 # (S, hd/2)
    window_index = np.concatenate(window_index_list)
    cu_window = np.concatenate(cu_window_list)
    cu_window = cu_window[np.concatenate(([True], cu_window[1:] != cu_window[:-1]))]
    cu_full = np.concatenate(cu_full_list)
    cu_full = np.concatenate(([0], np.cumsum(cu_full))).astype(np.int64)

    cos_half = np.cos(rotary).astype(np.float32)
    sin_half = np.sin(rotary).astype(np.float32)
    cos = jnp.asarray(np.concatenate([cos_half, cos_half], axis=-1))   # (S, hd)
    sin = jnp.asarray(np.concatenate([sin_half, sin_half], axis=-1))   # (S, hd)

    attn_tile = _pick_tile(seq_len, 256, 128)
    seg_full = seg_ids_from_cu(cu_full, seq_len)
    seg_window = seg_ids_from_cu(cu_window, seq_len)
    seg_full_col = jnp.asarray(seg_full.reshape(seq_len, 1))
    seg_full_row = jnp.asarray(seg_full.reshape(1, seq_len))
    seg_win_col = jnp.asarray(seg_window.reshape(seq_len, 1))
    seg_win_row = jnp.asarray(seg_window.reshape(1, seq_len))
    kv_full = kv_tile_ranges(cu_full, seq_len, attn_tile)
    kv_win = kv_tile_ranges(cu_window, seq_len, attn_tile)

    # Patch embed (Conv3d with kernel==stride, no bias) == flattened linear.
    hs = pallas_matmul(x, params['patch_embed_w'], out_dtype=jnp.bfloat16)

    # Reorder tokens into window order (groups of spatial_merge_unit).
    # TODO(synk): data-dependent gather stays in plain JAX.
    hs = hs.reshape(seq_len // smu, smu, hidden)[jnp.asarray(window_index)]
    hs = hs.reshape(seq_len, hidden)

    scale = 1.0 / float(np.sqrt(head_dim))
    for layer_num, bp in enumerate(params['blocks']):
        if layer_num in cfg['fullatt_block_indexes']:
            seg_col, seg_row = seg_full_col, seg_full_row
            kv_start, kv_end = kv_full
        else:
            seg_col, seg_row = seg_win_col, seg_win_row
            kv_start, kv_end = kv_win

        # --- attention: fused RMSNorm+QKV, RoPE pre-pass, flash attn,
        #     projection fused with the residual add
        qkv = pallas_norm_linear(hs, bp['norm1_w'], bp['qkv_w'], bp['qkv_b'], eps)
        q, k, v = pallas_rope_split(qkv, cos, sin, num_heads, head_dim, scale)
        attn = pallas_flash_attention(q, k, v, seg_col, seg_row, kv_start,
                                      kv_end, tile=attn_tile)
        hs = pallas_matmul(attn, bp['proj_w'], bp['proj_b'], residual=hs,
                           out_dtype=jnp.bfloat16)

        # --- MLP: fused RMSNorm + gate/up + SiLU, down proj fused w/ residual
        gu = pallas_norm_glu(hs, bp['norm2_w'], bp['gate_w'], bp['gate_b'],
                             bp['up_w'], bp['up_b'], eps)
        hs = pallas_matmul(gu, bp['down_w'], bp['down_b'], residual=hs,
                           out_dtype=jnp.bfloat16)

    # --- merger ---
    y = pallas_rmsnorm(hs, params['ln_q_w'], eps)
    y = y.reshape(-1, hidden * smu)
    y = pallas_matmul(y, params['fc1_w'], params['fc1_b'], out_dtype=jnp.float32)
    # TODO(synk): exact erf-based GELU kept in plain JAX (erf lowering in Mosaic
    # is not guaranteed); the surrounding matmuls are Pallas.
    y = jax.nn.gelu(y, approximate=False)
    y = pallas_matmul(y, params['fc2_w'], params['fc2_b'], out_dtype=jnp.float32)

    reverse_indices = np.argsort(window_index)
    return y[jnp.asarray(reverse_indices)]


# ----------------------------- parameter init -------------------------------

def init_params(key, cfg):
    hidden = cfg['hidden_size']
    patch_in = cfg['in_channels'] * cfg['temporal_patch_size'] * cfg['patch_size'] ** 2
    inter = cfg['intermediate_size']
    out_hidden = cfg['out_hidden_size']
    smu = cfg['spatial_merge_size'] ** 2
    merge_hidden = hidden * smu

    counter = [0]

    def nrm(shape, scale=0.02, dtype=jnp.float32):
        counter[0] += 1
        k = jax.random.fold_in(key, counter[0])
        return (scale * jax.random.normal(k, shape, jnp.float32)).astype(dtype)

    params = {
        'patch_embed_w': nrm((patch_in, hidden), dtype=jnp.bfloat16),
        'blocks': [],
        'ln_q_w': jnp.ones((hidden,), jnp.float32),
        'fc1_w': nrm((merge_hidden, merge_hidden), dtype=jnp.bfloat16),
        'fc1_b': nrm((merge_hidden,)),
        'fc2_w': nrm((merge_hidden, out_hidden), dtype=jnp.bfloat16),
        'fc2_b': nrm((out_hidden,)),
    }
    for _ in range(cfg['depth']):
        params['blocks'].append({
            'norm1_w': jnp.ones((hidden,), jnp.float32),
            'norm2_w': jnp.ones((hidden,), jnp.float32),
            'qkv_w': nrm((hidden, 3 * hidden), dtype=jnp.bfloat16),
            'qkv_b': nrm((3 * hidden,)),
            'proj_w': nrm((hidden, hidden), dtype=jnp.bfloat16),
            'proj_b': nrm((hidden,)),
            'gate_w': nrm((hidden, inter), dtype=jnp.bfloat16),
            'gate_b': nrm((inter,)),
            'up_w': nrm((hidden, inter), dtype=jnp.bfloat16),
            'up_b': nrm((inter,)),
            'down_w': nrm((inter, hidden), dtype=jnp.bfloat16),
            'down_b': nrm((hidden,)),
        })
    return params


# ---------------------------------- main -------------------------------------

if __name__ == "__main__":
    cfg = dict(
        patch_size=2,
        temporal_patch_size=2,
        in_channels=3,
        hidden_size=256,
        num_heads=2,
        intermediate_size=512,
        out_hidden_size=128,
        depth=2,
        spatial_merge_size=2,
        window_size=16,
        fullatt_block_indexes=(0,),
        norm_eps=1e-6,
    )
    grid_thw = [(1, 32, 32)]                                 # one image, 32x32 patches
    seq_len = sum(t * h * w for t, h, w in grid_thw)         # 1024 tokens
    feat = cfg['in_channels'] * cfg['temporal_patch_size'] * cfg['patch_size'] ** 2

    key = jax.random.PRNGKey(0)
    pkey, xkey = jax.random.split(key)
    params = init_params(pkey, cfg)
    x = jax.random.normal(xkey, (seq_len, feat), jnp.float32)   # (1024, 24)

    out = vision_transformer_forward(params, x, grid_thw, cfg)
    out = jax.block_until_ready(out)
    expected = (seq_len // cfg['spatial_merge_size'] ** 2, cfg['out_hidden_size'])
    assert out.shape == expected, (out.shape, expected)
    assert bool(jnp.all(jnp.isfinite(out.astype(jnp.float32))))
    print("KERNEL_OK")
</pallas_src>

<mosaic_0001>
module attributes {stable_mosaic.version = 11 : i64} {
  func.func @_mm_kernel(%arg0: i32, %arg1: i32, %arg2: i32, %arg3: memref<512x128xbf16, #tpu.memory_space<vmem>>, %arg4: memref<128x256xbf16, #tpu.memory_space<vmem>>, %arg5: memref<1x256xf32, #tpu.memory_space<vmem>>, %arg6: memref<512x256xbf16, #tpu.memory_space<vmem>>, %arg7: memref<512x256xf32, #tpu.memory_space<vmem>>) attributes {dimension_semantics = [#tpu.dimension_semantics<parallel>, #tpu.dimension_semantics<parallel>, #tpu.dimension_semantics<arbitrary>], iteration_bounds = array<i64: 2, 1, 1>, scalar_prefetch = 0 : i64, scratch_operands = 1 : i64, tpu.core_type = #tpu.core_type<tc>, window_params = [{transform_indices = @transform_0, window_bounds = array<i64: 512, 128>}, {transform_indices = @transform_1, window_bounds = array<i64: 128, 256>}, {transform_indices = @transform_2, window_bounds = array<i64: 1, 256>}, {transform_indices = @transform_3, window_bounds = array<i64: 512, 256>}]} {
    %c0_i32 = arith.constant 0 : i32
    %0 = arith.cmpi eq, %arg2, %c0_i32 : i32
    %1 = arith.extui %0 : i1 to i32
    %c0_i32_0 = arith.constant 0 : i32
    %2 = arith.cmpi ne, %1, %c0_i32_0 : i32
    scf.if %2 {
      %cst_10 = arith.constant 0.000000e+00 : f32
      %12 = vector.broadcast %cst_10 : f32 to vector<512x256xf32>
      %c0_11 = arith.constant 0 : index
      %c0_12 = arith.constant 0 : index
      %13 = vector.load %arg7[%c0_11, %c0_12] : memref<512x256xf32, #tpu.memory_space<vmem>>, vector<512x256xf32>
      tpu.vector_store %arg7[%c0_11, %c0_12], %12 {strides = array<i32>} : memref<512x256xf32, #tpu.memory_space<vmem>>, vector<512x256xf32>,
    } else {
    }
    %c0 = arith.constant 0 : index
    %c0_1 = arith.constant 0 : index
    %3 = vector.load %arg7[%c0, %c0_1] : memref<512x256xf32, #tpu.memory_space<vmem>>, vector<512x256xf32>
    %c0_2 = arith.constant 0 : index
    %c0_3 = arith.constant 0 : index
    %4 = vector.load %arg3[%c0_2, %c0_3] : memref<512x128xbf16, #tpu.memory_space<vmem>>, vector<512x128xbf16>
    %c0_4 = arith.constant 0 : index
    %c0_5 = arith.constant 0 : index
    %5 = vector.load %arg4[%c0_4, %c0_5] : memref<128x256xbf16, #tpu.memory_space<vmem>>, vector<128x256xbf16>
    %cst = arith.constant dense<0.000000e+00> : vector<512x256xf32>
    %6 = tpu.matmul %4, %5, %cst {dimension_numbers = #tpu.dot_dimension_numbers<[1], [0], [0], [1], [0, 0, 1, 1], [], []>} : vector<512x128xbf16>, vector<128x256xbf16>, vector<512x256xf32> -> vector<512x256xf32>
    %7 = arith.addf %3, %6 : vector<512x256xf32>
    %c0_6 = arith.constant 0 : index
    %c0_7 = arith.constant 0 : index
    %8 = vector.load %arg7[%c0_6, %c0_7] : memref<512x256xf32, #tpu.memory_space<vmem>>, vector<512x256xf32>
    tpu.vector_store %arg7[%c0_6, %c0_7], %7 {strides = array<i32>} : memref<512x256xf32, #tpu.memory_space<vmem>>, vector<512x256xf32>,
    %c0_i32_8 = arith.constant 0 : i32
    %9 = arith.cmpi eq, %arg2, %c0_i32_8 : i32
    %10 = arith.extui %9 : i1 to i32
    %c0_i32_9 = arith.constant 0 : i32
    %11 = arith.cmpi ne, %10, %c0_i32_9 : i32
    scf.if %11 {
      %c0_10 = arith.constant 0 : index
      %c0_11 = arith.constant 0 : index
      %12 = vector.load %arg7[%c0_10, %c0_11] : memref<512x256xf32, #tpu.memory_space<vmem>>, vector<512x256xf32>
      %c0_12 = arith.constant 0 : index
      %c0_13 = arith.constant 0 : index
      %13 = vector.load %arg5[%c0_12, %c0_13] : memref<1x256xf32, #tpu.memory_space<vmem>>, vector<1x256xf32>
      %14 = vector.broadcast %13 : vector<1x256xf32> to vector<512x256xf32>
      %15 = arith.addf %12, %14 : vector<512x256xf32>
      %16 = arith.truncf %15 : vector<512x256xf32> to vector<512x256xbf16>
      %c0_14 = arith.constant 0 : index
      %c0_15 = arith.constant 0 : index
      %17 = vector.load %arg6[%c0_14, %c0_15] : memref<512x256xbf16, #tpu.memory_space<vmem>>, vector<512x256xbf16>
      tpu.vector_store %arg6[%c0_14, %c0_15], %16 {strides = array<i32>} : memref<512x256xbf16, #tpu.memory_space<vmem>>, vector<512x256xbf16>,
    } else {
    }
    return
  }
  func.func @transform_0(%arg0: i32, %arg1: i32, %arg2: i32) -> (i32, i32) {
    %c0_i32 = arith.constant 0 : i32
    return %arg0, %arg2 : i32, i32
  }
  func.func @transform_1(%arg0: i32, %arg1: i32, %arg2: i32) -> (i32, i32) {
    %c0_i32 = arith.constant 0 : i32
    return %arg2, %arg1 : i32, i32
  }
  func.func @transform_2(%arg0: i32, %arg1: i32, %arg2: i32) -> (i32, i32) {
    %c0_i32 = arith.constant 0 : i32
    %c0_i32_0 = arith.constant 0 : i32
    return %c0_i32, %arg1 : i32, i32
  }
  func.func @transform_3(%arg0: i32, %arg1: i32, %arg2: i32) -> (i32, i32) {
    %c0_i32 = arith.constant 0 : i32
    return %arg0, %arg1 : i32, i32
  }
}

</mosaic_0001>

<bundles_post_ra>
// kernel: tpu_custom_call.1
= control target key start
LH: loop header
LB: loop body
LE: loop exit
PB: predicated region body
PF: predicated region fallthrough
CT: control target
= control target key end

     0   :  { %8 = vsyncpa [#allocation4], 0  ;;  %s3353_s0 = inlined_call_operand.hbm [shape: bf16[1024,128], index: 0, kind: input, shape index: {}]   ;;  %s3354_s1 = inlined_call_operand.hbm [shape: bf16[128,256], index: 1, kind: input, shape index: {}]   ;;  %s3355_s2 = inlined_call_operand.vmem [shape: f32[1,256], index: 2, kind: input, shape index: {}]   ;;  %s3356_s3 = inlined_call_operand.hbm [shape: bf16[1024,256], index: 3, kind: output, shape index: {}]  }
   0x1   :  { %10 = vsyncpa [#allocation4 + $0x1], 0 }
   0x2   :  { %11 = vsyncpa [#allocation7], 0 }
   0x3   :  { %12 = vsyncpa [#allocation5], 0 }
   0x4   :  { %14 = vsyncpa [#allocation5 + $0x1], 0  ;;  %s2865_s12 = smov 0   ;;  %s2867_s13 = smov 0  }
   0x5   :  { %s2869_s14 = smov 0   ;;  %s2871_s15 = smov 0  }
   0x6   :  { %s2873_s16 = smov 0   ;;  %s2875_s17 = smov 0  }
   0x7 LB: > { %s2339_s18 = sadd.s32 4294967295, %s2833_s17   ;;  %s2340_s19 = sadd.s32 4294967294, %s2833_s17   ;;  %s2833_s17 = sphi %s2875_s17, %s20_s17   ;;  %s2829_s16 = sphi %s2873_s16, %s3380_s16   ;;  %s2825_s15 = sphi %s2871_s15, %s3379_s15   ;;  %s2821_s14 = sphi %s2869_s14, %s3378_s14   ;;  %s2817_s13 = sphi %s2867_s13, %s3377_s13   ;;  %s2813_s12 = sphi %s2865_s12, %s3376_s12  }
   0x8   : > { %p61_p0 = scmp.ne.s32.totalorder %s2817_s13, %s2813_s12  ;;  %p2899_p1 = scmp.eq.s32.totalorder %s2339_s18, 0 }
   0x9   : > { %p2903_p2 = scmp.eq.s32.totalorder %s2339_s18, 1  ;;  %p147_p3 = scmp.eq.s32.totalorder %s2340_s19, 1 }
   0xa   : > { %s3361_s20 = scalar_select %p2899_p1, 1, 0 }
   0xb   : > { %s3362_s21 = scalar_select %p2903_p2, 1, 0 }
   0xc   : > { %p2909_p4 = por %p2899_p1, %p61_p0  ;;  %p2341_p5 = scmp.ge.s32.totalorder %s2833_s17, 1 }
   0xd   : > { %p2914_p6 = por %p147_p3, %p61_p0  ;;  %p154_p7 = scmp.lt.s32.totalorder %s2833_s17, 3 }
   0xe   : > { %s3363_s22 = scalar_select %p2909_p4, 1, 0 }
   0xf   : > { %s3364_s23 = scalar_select %p2914_p6, 1, 0 }
  0x10   : > { %p2919_p8 = pnand %p2341_p5, %p154_p7  ;;  %s2835_s25 = smov [#allocation6]  }
  0x11   : > { %s172_s26 = sshll.u32 %s2835_s25, 4  ;;  %s39_s28 = sadd.s32 1, %s2829_s16  ;;  %s173_s26 = int_to_ptr.vmem [resolvable:$true] %s172_s26 }
  0x12   : > { %s3365_s24 = scalar_select %p2919_p8, 1, 0 }
  0x13   : > { %p2561_p9 = pneg %p2919_p8  ;;  %s2689_s4 = scalar_lea.hbm %s3354_s1, 2048 }
  0x14   : > { %p2690_p12 = scmp.ne.s32.totalorder %s3354_s1, %s2689_s4  ;;  %p2696_p5 = scmp.lt.u32.totalorder %s2689_s4, %s3354_s1 }
  0x15   : > { %p2928_p11 = pnand %p2561_p9, %p2899_p1 }
  0x17   : > { %p2691_p13 = pneg %p2928_p11 }
  0x19   : > { %p2692_p0 = pnand %p2691_p13, %p2690_p12 }
  0x1b   : > { %p2693_p3 = pneg %p2692_p0 }
  0x1d   : > { %p2698_p7 = pnand %p2696_p5, %p2693_p3 }
  0x1f   : > { %2701 = shalt.err (!%p2698_p7)
}
  0x20   : > { %s2702_s9 = scalar_lea.vmem %s173_s26, 2048  ;;  %p2710_p1 = scmp.lt.s32.totalorder %s173_s26, %s173_s26 }
  0x21   : > { %p2703_p9 = scmp.ne.s32.totalorder %s173_s26, %s2702_s9  ;;  %p2711_p4 = scmp.lt.s32.totalorder %s2702_s9, %s2702_s9 }
  0x23   : > { %p2705_p10 = pnand %p2703_p9, %p2691_p13  ;;  %p2712_p8 = por %p2711_p4, %p2710_p1 }
  0x25   : > { %p2706_p6 = pneg %p2705_p10 }
  0x27   : > { %p2713_p2 = pnand %p2712_p8, %p2706_p6 }
  0x29   : > { %2716 = shalt.err (!%p2713_p2)
}
  0x2a   : > { %s2836_s10 = smov 128   ;;  %s2837_s11 = smov 8  }
  0x2b   : > { %2564 = dma.hbm_to_vmem [thread:$0]  (!%p2928_p11), %s3354_s1, 2048, %s173_s26, [#allocation7], %s2836_s10, %s2836_s10, %s2837_s11  }
  0x2c   : > { %p41_p1 = scmp.ge.s32.totalorder %s39_s28, 2  ;;  %s48_s25 = sadd.s32 1, %s2821_s14 }
  0x2d   : > { %p55_p2 = scmp.ne.s32.totalorder %s2821_s14, %s2817_s13  ;;  %p56_p4 = scmp.eq.s32.totalorder %s2833_s17, 0 }
  0x2e   : > { %s3382_s28 = smov (%p41_p1, %s39_s28), 0  ;;  %p3368_p8 = scmp.ne.s32.totalorder %s3362_s21, 0 }
  0x2f   : > { %p2955_p6 = por %p56_p4, %p55_p2  ;;  %s43_s27 = ssub.s32 %s2829_s16, %s3382_s28 }
  0x30   : > { %p2961_p10 = por %p3368_p8, %p55_p2  ;;  %p2574_p12 = scmp.lt.s32.totalorder %s2833_s17, 2 }
  0x31   : > { %p46_p11 = scmp.eq.s32.totalorder %s43_s27, 0  ;;  %s194_s26 = sand.u32 1, %s2821_s14  }
  0x32   : > { %s2345_s4 = sshll.u32 %s194_s26, 8  ;;  %s2470_s6 = sshll.u32 %s2829_s16, 12 }
  0x33   : > { %s2970_s5 = scalar_select %p46_p11, %s2821_s14, %s48_s25  }
  0x34   : > { %s2976_s9 = scalar_lea.hbm %s3353_s0, %s2470_s6  ;;  %s198_s21 = scalar_lea.vmem [#allocation3], %s2345_s4 }
  0x35   : > { %s206_s10 = sshll.u32 %s198_s21, 4  ;;  %p2982_p13 = pnand %p2574_p12, %p2955_p6  ;;  %s2978_s10 = int_to_ptr.vmem [resolvable:$true] %s206_s10 }
  0x36   : > { %s2986_s18 = scalar_lea.sflag [#allocation4], %s194_s26  ;;  %s2717_s19 = scalar_lea.hbm %s2976_s9, 4096 }
  0x37   : > { %p2718_p0 = scmp.ne.s32.totalorder %s2976_s9, %s2717_s19  ;;  %p2719_p3 = pneg %p2982_p13 }
  0x38   : > { %s2722_s29 = scalar_lea.hbm %s3353_s0, 8192  ;;  %p2723_p9 = scmp.lt.u32.totalorder %s2976_s9, %s3353_s0 }
  0x39   : > { %p2720_p5 = pnand %p2719_p3, %p2718_p0  ;;  %p2724_p1 = scmp.lt.u32.totalorder %s2722_s29, %s2717_s19 }
  0x3a   : > { %p2726_p4 = scmp.lt.u32.totalorder %s2717_s19, %s2976_s9 }
  0x3b   : > { %p2721_p7 = pneg %p2720_p5  ;;  %p2725_p2 = por %p2724_p1, %p2723_p9 }
  0x3d   : > { %p2727_p6 = por %p2726_p4, %p2725_p2 }
  0x3f   : > { %p2728_p8 = pnand %p2727_p6, %p2721_p7 }
  0x41   : > { %2731 = shalt.err (!%p2728_p8)
}
  0x42   : > { %s2732_s26 = scalar_lea.vmem %s2978_s10, 4096  ;;  %s2838_s7 = smov [#allocation3]  }
  0x43   : > { %p2733_p12 = scmp.ne.s32.totalorder %s2978_s10, %s2732_s26  ;;  %s2737_s8 = sshll.u32 %s2838_s7, 4  ;;  %s2738_s8 = int_to_ptr.vmem [resolvable:$false] %s2737_s8 }
  0x44   : > { %s2739_s21 = scalar_lea.vmem %s2738_s8, 8192  ;;  %p2740_p5 = scmp.lt.s32.totalorder %s2978_s10, %s2738_s8 }
  0x45   : > { %p2735_p11 = pnand %p2733_p12, %p2719_p3  ;;  %p2741_p9 = scmp.lt.s32.totalorder %s2739_s21, %s2732_s26 }
  0x47   : > { %p2736_p0 = pneg %p2735_p11  ;;  %p2742_p1 = por %p2741_p9, %p2740_p5 }
  0x49   : > { %p2743_p2 = pnand %p2742_p1, %p2736_p0 }
  0x4b   : > { %2746 = shalt.err (!%p2743_p2)
}
  0x4c   : > { %s2839_s19 = smov 64   ;;  %s2840_s25 = smov 4  }
  0x4d   : > { %2568 = dma.hbm_to_vmem [thread:$0]  (!%p2982_p13), %s2976_s9, 4096, %s2978_s10, %s2986_s18, %s2839_s19, %s2839_s19, %s2840_s25  }
  0x4e   : > { %p3371_p3 = scmp.ne.s32.totalorder %s3365_s24, 0 }
  0x4f   : > { %s3017_s27 = sand.u32 (!%p3371_p3), 1, %s2817_s13   ;;  %p3372_p7 = scmp.ne.s32.totalorder (!%p3371_p3), %s3363_s22, 0 }
  0x50   : > { %218 = sbr.rel (%p3371_p3) target bundleno = 479 (0x1df), region = 32  ;;  %s2349_s29 = sshll.u32 (!%p3371_p3), %s3017_s27, 8 }
  0x51   : > { %s221_s4 = scalar_lea.sflag (!%p3371_p3), [#allocation4], %s3017_s27  ;;  %s3021_s6 = scalar_lea.vmem (!%p3371_p3), [#allocation3], %s2349_s29 }
  0x57   : > { %2800 = dma.done.wait (%p3372_p7), %s221_s4, 4096  }
  0x58   : > { %2802 = vsyncadd (%p3372_p7), %s221_s4, 4294963200  ;;  %p3373_p13 = scmp.ne.s32.totalorder %s3361_s20, 0 }
  0x5a   : > { %2804 = dma.done.wait (%p3373_p13), [#allocation7], 2048  }
  0x5b   : > { %2806 = vsyncadd (%p3373_p13), [#allocation7], 4294965248  ;;  %v2841_v0 = vmov 0   ;;  %v2633_v1 = vld [vmem:[#allocation6 + $0x4] ss:$8 sps:$4 sm:$0xff]   ;;  %v2661_v21 = vld [vmem:[%s3021_s6 + $0x10] sm:$0xff]   ;;  %v1620_v49 = vlaneseq }
  0x5c   : > { %910 = vmatprep.mubr.bf16.mxu0 %v2841_v0  ;;  %1070 = vmatprep.mubr.bf16.mxu1 %v2841_v0  ;;  %v2635_v2 = vld [vmem:[#allocation6] ss:$8 sps:$4 sm:$0xff]   ;;  %v2636_v3 = vld [vmem:[#allocation6 + $0x14] ss:$8 sps:$4 sm:$0xff]   ;;  %v2638_v4 = vld [vmem:[#allocation6 + $0x10] ss:$8 sps:$4 sm:$0xff]  }
  0x5d   : > { %878 = vmatprep.subr.bf16.mxu0 %v2633_v1  ;;  %2537 = vmatprep.subr.bf16.mxu1 %v2633_v1  ;;  %v2639_v5 = vld [vmem:[#allocation6 + $0x24] ss:$8 sps:$4 sm:$0xff]   ;;  %v2641_v6 = vld [vmem:[#allocation6 + $0x20] ss:$8 sps:$4 sm:$0xff]   ;;  %v2642_v7 = vld [vmem:[#allocation6 + $0x34] ss:$8 sps:$4 sm:$0xff]  }
  0x5e   : > { %879 = vmatpush1.bf16.msra.mxu0 %v2635_v2  ;;  %2545 = vmatpush1.bf16.msra.mxu1 %v2635_v2  ;;  %v2644_v8 = vld [vmem:[#allocation6 + $0x30] ss:$8 sps:$4 sm:$0xff]   ;;  %v2645_v9 = vld [vmem:[#allocation6 + $0x44] ss:$8 sps:$4 sm:$0xff]   ;;  %v2647_v10 = vld [vmem:[#allocation6 + $0x40] ss:$8 sps:$4 sm:$0xff]  }
  0x5f   : > { %880 = vmatprep.subr.bf16.mxu0 %v2636_v3  ;;  %2538 = vmatprep.subr.bf16.mxu1 %v2636_v3  ;;  %v2648_v11 = vld [vmem:[#allocation6 + $0x54] ss:$8 sps:$4 sm:$0xff]   ;;  %v2650_v12 = vld [vmem:[#allocation6 + $0x50] ss:$8 sps:$4 sm:$0xff]   ;;  %v2651_v13 = vld [vmem:[#allocation6 + $0x64] ss:$8 sps:$4 sm:$0xff]  }
  0x60   : > { %v2653_v14 = vld [vmem:[#allocation6 + $0x60] ss:$8 sps:$4 sm:$0xff]   ;;  %v2654_v15 = vld [vmem:[#allocation6 + $0x74] ss:$8 sps:$4 sm:$0xff]   ;;  %v2656_v16 = vld [vmem:[#allocation6 + $0x70] ss:$8 sps:$4 sm:$0xff]  }
  0x61   : > { %v2657_v17 = vld [vmem:[%s3021_s6] sm:$0xff]   ;;  %v2659_v19 = vld [vmem:[%s3021_s6 + $0x8] sm:$0xff]   ;;  %v2662_v22 = vld [vmem:[%s3021_s6 + $0x90] sm:$0xff]   ;;  %v1621_v50 = vshrl.u32 %v1620_v49, 7  ;;  %s2351_s24 = sshll.u32 %s3017_s27, 9  ;;  %s2536_s10 = sshll.u32 %s2825_s15, 13 }
  0x62   : > { %881 = vmatpush1.bf16.msra.mxu0 %v2638_v4  ;;  %2546 = vmatpush1.bf16.msra.mxu1 %v2638_v4  ;;  %v2658_v18 = vld [vmem:[%s3021_s6 + $0x80] sm:$0xff]   ;;  %v2660_v20 = vld [vmem:[%s3021_s6 + $0x88] sm:$0xff]   ;;  %v2663_v23 = vld [vmem:[%s3021_s6 + $0x18] sm:$0xff]   ;;  %s3111_s9 = scalar_lea.vmem [#allocation8], %s2351_s24  ;;  %s3298_s15 = scalar_lea.hbm %s3356_s3, %s2536_s10 }
  0x63   : > { %882 = vmatprep.subr.bf16.mxu0 %v2639_v5  ;;  %2539 = vmatprep.subr.bf16.mxu1 %v2639_v5  ;;  %v2664_v24 = vld [vmem:[%s3021_s6 + $0x98] sm:$0xff]   ;;  %v2665_v25 = vld [vmem:[%s3021_s6 + $0x20] sm:$0xff]   ;;  %v2667_v27 = vld [vmem:[%s3021_s6 + $0x28] sm:$0xff]   ;;  %v1622_v51 = vsub.s32 0, %v1621_v50  ;;  %v1626_v53 = vsub.s32 1, %v1621_v50  ;;  %s2223_s11 = sshll.u32 %s3111_s9, 4  ;;  %s3300_s11 = int_to_ptr.vmem [resolvable:$true] %s2223_s11 }
  0x64   : > { %v2666_v26 = vld [vmem:[%s3021_s6 + $0xa0] sm:$0xff]   ;;  %v2668_v28 = vld [vmem:[%s3021_s6 + $0xa8] sm:$0xff]   ;;  %v2669_v29 = vld [vmem:[%s3021_s6 + $0x30] sm:$0xff]   ;;  %s2207_s7 = scalar_lea.sflag [#allocation5], %s3017_s27  ;;  %s2747_s8 = scalar_lea.vmem %s3300_s11, 8192 }
  0x65   : > { %v2670_v30 = vld [vmem:[%s3021_s6 + $0xb0] sm:$0xff]   ;;  %v2671_v31 = vld [vmem:[%s3021_s6 + $0x38] sm:$0xff]   ;;  %v2673_v33 = vld [vmem:[%s3021_s6 + $0x40] sm:$0xff]   ;;  %p2748_p4 = scmp.ne.s32.totalorder %s3300_s11, %s2747_s8  ;;  %s2842_s21 = smov [#allocation8]  }
  0x66   : > { %883 = vmatpush1.bf16.msra.mxu0 %v2641_v6  ;;  %2547 = vmatpush1.bf16.msra.mxu1 %v2641_v6  ;;  %v2672_v32 = vld [vmem:[%s3021_s6 + $0xb8] sm:$0xff]   ;;  %v2674_v34 = vld [vmem:[%s3021_s6 + $0xc0] sm:$0xff]   ;;  %v2675_v35 = vld [vmem:[%s3021_s6 + $0x48] sm:$0xff]   ;;  %s2751_s19 = sshll.u32 %s2842_s21, 4  ;;  %s2752_s19 = int_to_ptr.vmem [resolvable:$false] %s2751_s19 }
  0x67   : > { %884 = vmatprep.subr.bf16.mxu0 %v2642_v7  ;;  %2540 = vmatprep.subr.bf16.mxu1 %v2642_v7  ;;  %v2676_v36 = vld [vmem:[%s3021_s6 + $0xc8] sm:$0xff]   ;;  %v2677_v37 = vld [vmem:[%s3021_s6 + $0x50] sm:$0xff]   ;;  %v2679_v39 = vld [vmem:[%s3021_s6 + $0x58] sm:$0xff]   ;;  %p2749_p6 = pnand %p2748_p4, %p2961_p10  ;;  %s2753_s25 = scalar_lea.vmem %s2752_s19, 16384 }
  0x68   : > { %v2678_v38 = vld [vmem:[%s3021_s6 + $0xd0] sm:$0xff]   ;;  %v2680_v40 = vld [vmem:[%s3021_s6 + $0xd8] sm:$0xff]   ;;  %v2681_v41 = vld [vmem:[%s3021_s6 + $0x60] sm:$0xff]   ;;  %p2754_p12 = scmp.lt.s32.totalorder %s3300_s11, %s2752_s19  ;;  %p2755_p11 = scmp.lt.s32.totalorder %s2753_s25, %s2747_s8 }
  0x69   : > { %v2682_v42 = vld [vmem:[%s3021_s6 + $0xe0] sm:$0xff]   ;;  %v2683_v43 = vld [vmem:[%s3021_s6 + $0x68] sm:$0xff]   ;;  %v2685_v45 = vld [vmem:[%s3021_s6 + $0x70] sm:$0xff]   ;;  %p2750_p8 = pneg %p2749_p6 }
  0x6a   : > { %885 = vmatpush1.bf16.msra.mxu0 %v2644_v8  ;;  %2548 = vmatpush1.bf16.msra.mxu1 %v2644_v8  ;;  %v2684_v44 = vld [vmem:[%s3021_s6 + $0xe8] sm:$0xff]   ;;  %v2686_v46 = vld [vmem:[%s3021_s6 + $0xf0] sm:$0xff]   ;;  %v2687_v47 = vld [vmem:[%s3021_s6 + $0x78] sm:$0xff]   ;;  %p2756_p0 = por %p2755_p11, %p2754_p12 }
  0x6b   : > { %886 = vmatprep.subr.bf16.mxu0 %v2645_v9  ;;  %2541 = vmatprep.subr.bf16.mxu1 %v2645_v9  ;;  %v2688_v48 = vld [vmem:[%s3021_s6 + $0xf8] sm:$0xff]   ;;  %v1618_v52 = vld [vmem:[%s3355_s2] sm:$0x3] }
  0x6c   : > { %v3098_v54 = vrot.slane %v1618_v52, %v1622_v51  ;;  %v3100_v55 = vrot.slane %v1618_v52, %v1626_v53  ;;  %p2757_p5 = pnand %p2756_p0, %p2750_p8 }
  0x6e   : > { %887 = vmatpush1.bf16.msra.mxu0 %v2647_v10  ;;  %2549 = vmatpush1.bf16.msra.mxu1 %v2647_v10 }
  0x6f   : > { %888 = vmatprep.subr.bf16.mxu0 %v2648_v11  ;;  %2542 = vmatprep.subr.bf16.mxu1 %v2648_v11 }
  0x72   : > { %889 = vmatpush1.bf16.msra.mxu0 %v2650_v12  ;;  %2550 = vmatpush1.bf16.msra.mxu1 %v2650_v12 }
  0x73   : > { %890 = vmatprep.subr.bf16.mxu0 %v2651_v13  ;;  %2543 = vmatprep.subr.bf16.mxu1 %v2651_v13 }
  0x76   : > { %891 = vmatpush1.bf16.msra.mxu0 %v2653_v14  ;;  %2551 = vmatpush1.bf16.msra.mxu1 %v2653_v14 }
  0x77   : > { %892 = vmatprep.subr.bf16.mxu0 %v2654_v15  ;;  %2544 = vmatprep.subr.bf16.mxu1 %v2654_v15 }
  0x7a   : > { %893 = vmatpush1.bf16.msra.mxu0 %v2656_v16  ;;  %2552 = vmatpush1.bf16.msra.mxu1 %v2656_v16 }
  0x7d   : > { %911 = vmatmul.mubr.bf16.vlgmr.msra.gmra.mrb[0].mxu0 %v2657_v17  ;;  %1071 = vmatmul.mubr.bf16.vlgmr.msra.gmra.mrb[0].mxu1 %v2658_v18 }
  0x7e   : > { %920 = vmatprep.mubr.bf16.mxu0 %v2841_v0  ;;  %1080 = vmatprep.mubr.bf16.mxu1 %v2841_v0 }
  0x85   : > { %921 = vmatmul.mubr.bf16.gmra.mrb[4].mxu0 %v2659_v19  ;;  %1081 = vmatmul.mubr.bf16.gmra.mrb[4].mxu1 %v2660_v20 }
  0x86   : > { %930 = vmatprep.mubr.bf16.mxu0 %v2841_v0  ;;  %1090 = vmatprep.mubr.bf16.mxu1 %v2841_v0 }
  0x8d   : > { %931 = vmatmul.mubr.bf16.gmra.mrb[8].mxu0 %v2661_v21  ;;  %1091 = vmatmul.mubr.bf16.gmra.mrb[8].mxu1 %v2662_v22 }
  0x8e   : > { %940 = vmatprep.mubr.bf16.mxu0 %v2841_v0  ;;  %1100 = vmatprep.mubr.bf16.mxu1 %v2841_v0 }
  0x95   : > { %941 = vmatmul.mubr.bf16.gmra.mrb[12].mxu0 %v2663_v23  ;;  %1101 = vmatmul.mubr.bf16.gmra.mrb[12].mxu1 %v2664_v24 }
  0x96   : > { %950 = vmatprep.mubr.bf16.mxu0 %v2841_v0  ;;  %1110 = vmatprep.mubr.bf16.mxu1 %v2841_v0 }
  0x9d   : > { %951 = vmatmul.mubr.bf16.gmra.mrb[16].mxu0 %v2665_v25  ;;  %1111 = vmatmul.mubr.bf16.gmra.mrb[16].mxu1 %v2666_v26 }
  0x9e   : > { %960 = vmatprep.mubr.bf16.mxu0 %v2841_v0  ;;  %1120 = vmatprep.mubr.bf16.mxu1 %v2841_v0 }
  0xa5   : > { %961 = vmatmul.mubr.bf16.gmra.mrb[20].mxu0 %v2667_v27  ;;  %1121 = vmatmul.mubr.bf16.gmra.mrb[20].mxu1 %v2668_v28 }
  0xa6   : > { %970 = vmatprep.mubr.bf16.mxu0 %v2841_v0  ;;  %1130 = vmatprep.mubr.bf16.mxu1 %v2841_v0 }
  0xad   : > { %971 = vmatmul.mubr.bf16.gmra.mrb[24].mxu0 %v2669_v29  ;;  %1131 = vmatmul.mubr.bf16.gmra.mrb[24].mxu1 %v2670_v30 }
  0xae   : > { %980 = vmatprep.mubr.bf16.mxu0 %v2841_v0  ;;  %1140 = vmatprep.mubr.bf16.mxu1 %v2841_v0 }
  0xb5   : > { %981 = vmatmul.mubr.bf16.gmra.mrb[28].mxu0 %v2671_v31  ;;  %1141 = vmatmul.mubr.bf16.gmra.mrb[28].mxu1 %v2672_v32 }
  0xb6   : > { %990 = vmatprep.mubr.bf16.mxu0 %v2841_v0  ;;  %1150 = vmatprep.mubr.bf16.mxu1 %v2841_v0 }
  0xbd   : > { %991 = vmatmul.mubr.bf16.gmra.mrb[32].mxu0 %v2673_v33  ;;  %1151 = vmatmul.mubr.bf16.gmra.mrb[32].mxu1 %v2674_v34 }
  0xbe   : > { %1000 = vmatprep.mubr.bf16.mxu0 %v2841_v0  ;;  %1160 = vmatprep.mubr.bf16.mxu1 %v2841_v0 }
  0xc5   : > { %1001 = vmatmul.mubr.bf16.gmra.mrb[36].mxu0 %v2675_v35  ;;  %1161 = vmatmul.mubr.bf16.gmra.mrb[36].mxu1 %v2676_v36 }
  0xc6   : > { %1010 = vmatprep.mubr.bf16.mxu0 %v2841_v0  ;;  %1170 = vmatprep.mubr.bf16.mxu1 %v2841_v0 }
  0xcd   : > { %1011 = vmatmul.mubr.bf16.gmra.mrb[40].mxu0 %v2677_v37  ;;  %1171 = vmatmul.mubr.bf16.gmra.mrb[40].mxu1 %v2678_v38 }
  0xce   : > { %1020 = vmatprep.mubr.bf16.mxu0 %v2841_v0  ;;  %1180 = vmatprep.mubr.bf16.mxu1 %v2841_v0 }
  0xd5   : > { %1021 = vmatmul.mubr.bf16.gmra.mrb[44].mxu0 %v2679_v39  ;;  %1181 = vmatmul.mubr.bf16.gmra.mrb[44].mxu1 %v2680_v40 }
  0xd6   : > { %1030 = vmatprep.mubr.bf16.mxu0 %v2841_v0  ;;  %1190 = vmatprep.mubr.bf16.mxu1 %v2841_v0 }
  0xdd   : > { %1031 = vmatmul.mubr.bf16.gmra.mrb[48].mxu0 %v2681_v41  ;;  %1191 = vmatmul.mubr.bf16.gmra.mrb[48].mxu1 %v2682_v42 }
  0xde   : > { %1040 = vmatprep.mubr.bf16.mxu0 %v2841_v0  ;;  %1200 = vmatprep.mubr.bf16.mxu1 %v2841_v0 }
  0xe5   : > { %1041 = vmatmul.mubr.bf16.gmra.mrb[52].mxu0 %v2683_v43  ;;  %1201 = vmatmul.mubr.bf16.gmra.mrb[52].mxu1 %v2684_v44 }
  0xe6   : > { %1050 = vmatprep.mubr.bf16.mxu0 %v2841_v0  ;;  %1210 = vmatprep.mubr.bf16.mxu1 %v2841_v0 }
  0xed   : > { %1051 = vmatmul.mubr.bf16.gmra.mrb[56].mxu0 %v2685_v45  ;;  %1211 = vmatmul.mubr.bf16.gmra.mrb[56].mxu1 %v2686_v46 }
  0xee   : > { %1060 = vmatprep.mubr.bf16.mxu0 %v2841_v0  ;;  %1220 = vmatprep.mubr.bf16.mxu1 %v2841_v0 }
  0xf5   : > { %1061 = vmatmul.mubr.bf16.gmra.mrb[60].mxu0 %v2687_v47  ;;  %1221 = vmatmul.mubr.bf16.gmra.mrb[60].mxu1 %v2688_v48 }
 0x150   : > { %v912_v56 = vpop.f32.mrb[0].mxu0  ;;  %v1072_v57 = vpop.f32.mrb[0].mxu1 }
 0x151   : > { %v1630_v58 = vadd.f32 %v3098_v54, %v912_v56  ;;  %v1694_v59 = vadd.f32 %v3098_v54, %v1072_v57  ;;  %v914_v60 = vpop.f32.mrb[1].mxu0  ;;  %v1074_v61 = vpop.f32.mrb[1].mxu1 }
 0x152   : > { %v1631_v62 = vadd.f32 %v3100_v55, %v914_v60  ;;  %v1695_v63 = vadd.f32 %v3100_v55, %v1074_v61  ;;  %v916_v0 = vpop.f32.mrb[2].mxu0  ;;  %v1076_v1 = vpop.f32.mrb[2].mxu1 }
 0x153   : > { %v1632_v2 = vadd.f32 %v3098_v54, %v916_v0  ;;  %v1696_v3 = vadd.f32 %v3098_v54, %v1076_v1  ;;  %v918_v4 = vpop.f32.mrb[3].mxu0  ;;  %v1078_v5 = vpop.f32.mrb[3].mxu1 }
 0x154   : > { %v2471_v6 = vpack.c.bf16 %v1631_v62, %v1630_v58  ;;  %v2503_v7 = vpack.c.bf16 %v1695_v63, %v1694_v59  ;;  %v1633_v8 = vadd.f32 %v3100_v55, %v918_v4  ;;  %v1697_v9 = vadd.f32 %v3100_v55, %v1078_v5 }
 0x156   : > { %2142 = vst [vmem:[%s3111_s9] sm:$0xff] %v2471_v6  ;;  %2174 = vst [vmem:[%s3111_s9 + $0x100] sm:$0xff] %v2503_v7  ;;  %v2472_v10 = vpack.c.bf16 %v1633_v8, %v1632_v2  ;;  %v2504_v11 = vpack.c.bf16 %v1697_v9, %v1696_v3 }
 0x158   : > { %2143 = vst [vmem:[%s3111_s9 + $0x8] sm:$0xff] %v2472_v10  ;;  %2175 = vst [vmem:[%s3111_s9 + $0x108] sm:$0xff] %v2504_v11  ;;  %v922_v12 = vpop.f32.mrb[4].mxu0  ;;  %v1082_v13 = vpop.f32.mrb[4].mxu1 }
 0x159   : > { %v1634_v14 = vadd.f32 %v3098_v54, %v922_v12  ;;  %v1698_v15 = vadd.f32 %v3098_v54, %v1082_v13  ;;  %v924_v16 = vpop.f32.mrb[5].mxu0  ;;  %v1084_v17 = vpop.f32.mrb[5].mxu1 }
 0x15a   : > { %v1635_v18 = vadd.f32 %v3100_v55, %v924_v16  ;;  %v1699_v19 = vadd.f32 %v3100_v55, %v1084_v17  ;;  %v926_v20 = vpop.f32.mrb[6].mxu0  ;;  %v1086_v21 = vpop.f32.mrb[6].mxu1 }
 0x15b   : > { %v1636_v22 = vadd.f32 %v3098_v54, %v926_v20  ;;  %v1700_v23 = vadd.f32 %v3098_v54, %v1086_v21  ;;  %v928_v24 = vpop.f32.mrb[7].mxu0  ;;  %v1088_v25 = vpop.f32.mrb[7].mxu1 }
 0x15c   : > { %v2473_v26 = vpack.c.bf16 %v1635_v18, %v1634_v14  ;;  %v2505_v27 = vpack.c.bf16 %v1699_v19, %v1698_v15  ;;  %v1637_v28 = vadd.f32 %v3100_v55, %v928_v24  ;;  %v1701_v29 = vadd.f32 %v3100_v55, %v1088_v25 }
 0x15e   : > { %2144 = vst [vmem:[%s3111_s9 + $0x10] sm:$0xff] %v2473_v26  ;;  %2176 = vst [vmem:[%s3111_s9 + $0x110] sm:$0xff] %v2505_v27  ;;  %v2474_v30 = vpack.c.bf16 %v1637_v28, %v1636_v22  ;;  %v2506_v31 = vpack.c.bf16 %v1701_v29, %v1700_v23 }
 0x160   : > { %2145 = vst [vmem:[%s3111_s9 + $0x18] sm:$0xff] %v2474_v30  ;;  %2177 = vst [vmem:[%s3111_s9 + $0x118] sm:$0xff] %v2506_v31  ;;  %v932_v32 = vpop.f32.mrb[8].mxu0  ;;  %v1092_v33 = vpop.f32.mrb[8].mxu1 }
 0x161   : > { %v1638_v34 = vadd.f32 %v3098_v54, %v932_v32  ;;  %v1702_v35 = vadd.f32 %v3098_v54, %v1092_v33  ;;  %v934_v36 = vpop.f32.mrb[9].mxu0  ;;  %v1094_v37 = vpop.f32.mrb[9].mxu1 }
 0x162   : > { %v1639_v38 = vadd.f32 %v3100_v55, %v934_v36  ;;  %v1703_v39 = vadd.f32 %v3100_v55, %v1094_v37  ;;  %v936_v40 = vpop.f32.mrb[10].mxu0  ;;  %v1096_v41 = vpop.f32.mrb[10].mxu1 }
 0x163   : > { %v1640_v42 = vadd.f32 %v3098_v54, %v936_v40  ;;  %v1704_v43 = vadd.f32 %v3098_v54, %v1096_v41  ;;  %v938_v44 = vpop.f32.mrb[11].mxu0  ;;  %v1098_v45 = vpop.f32.mrb[11].mxu1 }
 0x164   : > { %v2475_v46 = vpack.c.bf16 %v1639_v38, %v1638_v34  ;;  %v2507_v47 = vpack.c.bf16 %v1703_v39, %v1702_v35  ;;  %v1641_v48 = vadd.f32 %v3100_v55, %v938_v44  ;;  %v1705_v49 = vadd.f32 %v3100_v55, %v1098_v45 }
 0x166   : > { %2146 = vst [vmem:[%s3111_s9 + $0x20] sm:$0xff] %v2475_v46  ;;  %2178 = vst [vmem:[%s3111_s9 + $0x120] sm:$0xff] %v2507_v47  ;;  %v2476_v50 = vpack.c.bf16 %v1641_v48, %v1640_v42  ;;  %v2508_v51 = vpack.c.bf16 %v1705_v49, %v1704_v43 }
 0x168   : > { %2147 = vst [vmem:[%s3111_s9 + $0x28] sm:$0xff] %v2476_v50  ;;  %2179 = vst [vmem:[%s3111_s9 + $0x128] sm:$0xff] %v2508_v51  ;;  %v942_v52 = vpop.f32.mrb[12].mxu0  ;;  %v1102_v53 = vpop.f32.mrb[12].mxu1 }
 0x169   : > { %v1642_v56 = vadd.f32 %v3098_v54, %v942_v52  ;;  %v1706_v57 = vadd.f32 %v3098_v54, %v1102_v53  ;;  %v944_v58 = vpop.f32.mrb[13].mxu0  ;;  %v1104_v59 = vpop.f32.mrb[13].mxu1 }
 0x16a   : > { %v1643_v60 = vadd.f32 %v3100_v55, %v944_v58  ;;  %v1707_v61 = vadd.f32 %v3100_v55, %v1104_v59  ;;  %v946_v62 = vpop.f32.mrb[14].mxu0  ;;  %v1106_v63 = vpop.f32.mrb[14].mxu1 }
 0x16b   : > { %v1644_v0 = vadd.f32 %v3098_v54, %v946_v62  ;;  %v1708_v1 = vadd.f32 %v3098_v54, %v1106_v63  ;;  %v948_v2 = vpop.f32.mrb[15].mxu0  ;;  %v1108_v3 = vpop.f32.mrb[15].mxu1 }
 0x16c   : > { %v2477_v4 = vpack.c.bf16 %v1643_v60, %v1642_v56  ;;  %v2509_v5 = vpack.c.bf16 %v1707_v61, %v1706_v57  ;;  %v1645_v6 = vadd.f32 %v3100_v55, %v948_v2  ;;  %v1709_v7 = vadd.f32 %v3100_v55, %v1108_v3 }
 0x16e   : > { %2148 = vst [vmem:[%s3111_s9 + $0x30] sm:$0xff] %v2477_v4  ;;  %2180 = vst [vmem:[%s3111_s9 + $0x130] sm:$0xff] %v2509_v5  ;;  %v2478_v8 = vpack.c.bf16 %v1645_v6, %v1644_v0  ;;  %v2510_v9 = vpack.c.bf16 %v1709_v7, %v1708_v1 }
 0x170   : > { %2149 = vst [vmem:[%s3111_s9 + $0x38] sm:$0xff] %v2478_v8  ;;  %2181 = vst [vmem:[%s3111_s9 + $0x138] sm:$0xff] %v2510_v9  ;;  %v952_v10 = vpop.f32.mrb[16].mxu0  ;;  %v1112_v11 = vpop.f32.mrb[16].mxu1 }
 0x171   : > { %v1646_v12 = vadd.f32 %v3098_v54, %v952_v10  ;;  %v1710_v13 = vadd.f32 %v3098_v54, %v1112_v11  ;;  %v954_v14 = vpop.f32.mrb[17].mxu0  ;;  %v1114_v15 = vpop.f32.mrb[17].mxu1 }
 0x172   : > { %v1647_v16 = vadd.f32 %v3100_v55, %v954_v14  ;;  %v1711_v17 = vadd.f32 %v3100_v55, %v1114_v15  ;;  %v956_v18 = vpop.f32.mrb[18].mxu0  ;;  %v1116_v19 = vpop.f32.mrb[18].mxu1 }
 0x173   : > { %v1648_v20 = vadd.f32 %v3098_v54, %v956_v18  ;;  %v1712_v21 = vadd.f32 %v3098_v54, %v1116_v19  ;;  %v958_v22 = vpop.f32.mrb[19].mxu0  ;;  %v1118_v23 = vpop.f32.mrb[19].mxu1 }
 0x174   : > { %v2479_v24 = vpack.c.bf16 %v1647_v16, %v1646_v12  ;;  %v2511_v25 = vpack.c.bf16 %v1711_v17, %v1710_v13  ;;  %v1649_v26 = vadd.f32 %v3100_v55, %v958_v22  ;;  %v1713_v27 = vadd.f32 %v3100_v55, %v1118_v23 }
 0x176   : > { %2150 = vst [vmem:[%s3111_s9 + $0x40] sm:$0xff] %v2479_v24  ;;  %2182 = vst [vmem:[%s3111_s9 + $0x140] sm:$0xff] %v2511_v25  ;;  %v2480_v28 = vpack.c.bf16 %v1649_v26, %v1648_v20  ;;  %v2512_v29 = vpack.c.bf16 %v1713_v27, %v1712_v21 }
 0x178   : > { %2151 = vst [vmem:[%s3111_s9 + $0x48] sm:$0xff] %v2480_v28  ;;  %2183 = vst [vmem:[%s3111_s9 + $0x148] sm:$0xff] %v2512_v29  ;;  %v962_v30 = vpop.f32.mrb[20].mxu0  ;;  %v1122_v31 = vpop.f32.mrb[20].mxu1 }
 0x179   : > { %v1650_v32 = vadd.f32 %v3098_v54, %v962_v30  ;;  %v1714_v33 = vadd.f32 %v3098_v54, %v1122_v31  ;;  %v964_v34 = vpop.f32.mrb[21].mxu0  ;;  %v1124_v35 = vpop.f32.mrb[21].mxu1 }
 0x17a   : > { %v1651_v36 = vadd.f32 %v3100_v55, %v964_v34  ;;  %v1715_v37 = vadd.f32 %v3100_v55, %v1124_v35  ;;  %v966_v38 = vpop.f32.mrb[22].mxu0  ;;  %v1126_v39 = vpop.f32.mrb[22].mxu1 }
 0x17b   : > { %v1652_v40 = vadd.f32 %v3098_v54, %v966_v38  ;;  %v1716_v41 = vadd.f32 %v3098_v54, %v1126_v39  ;;  %v968_v42 = vpop.f32.mrb[23].mxu0  ;;  %v1128_v43 = vpop.f32.mrb[23].mxu1 }
 0x17c   : > { %v2481_v44 = vpack.c.bf16 %v1651_v36, %v1650_v32  ;;  %v2513_v45 = vpack.c.bf16 %v1715_v37, %v1714_v33  ;;  %v1653_v46 = vadd.f32 %v3100_v55, %v968_v42  ;;  %v1717_v47 = vadd.f32 %v3100_v55, %v1128_v43 }
 0x17e   : > { %2152 = vst [vmem:[%s3111_s9 + $0x50] sm:$0xff] %v2481_v44  ;;  %2184 = vst [vmem:[%s3111_s9 + $0x150] sm:$0xff] %v2513_v45  ;;  %v2482_v48 = vpack.c.bf16 %v1653_v46, %v1652_v40  ;;  %v2514_v49 = vpack.c.bf16 %v1717_v47, %v1716_v41 }
 0x180   : > { %2153 = vst [vmem:[%s3111_s9 + $0x58] sm:$0xff] %v2482_v48  ;;  %2185 = vst [vmem:[%s3111_s9 + $0x158] sm:$0xff] %v2514_v49  ;;  %v972_v50 = vpop.f32.mrb[24].mxu0  ;;  %v1132_v51 = vpop.f32.mrb[24].mxu1 }
 0x181   : > { %v1654_v52 = vadd.f32 %v3098_v54, %v972_v50  ;;  %v1718_v53 = vadd.f32 %v3098_v54, %v1132_v51  ;;  %v974_v56 = vpop.f32.mrb[25].mxu0  ;;  %v1134_v57 = vpop.f32.mrb[25].mxu1 }
 0x182   : > { %v1655_v58 = vadd.f32 %v3100_v55, %v974_v56  ;;  %v1719_v59 = vadd.f32 %v3100_v55, %v1134_v57  ;;  %v976_v60 = vpop.f32.mrb[26].mxu0  ;;  %v1136_v61 = vpop.f32.mrb[26].mxu1 }
 0x183   : > { %v1656_v62 = vadd.f32 %v3098_v54, %v976_v60  ;;  %v1720_v63 = vadd.f32 %v3098_v54, %v1136_v61  ;;  %v978_v0 = vpop.f32.mrb[27].mxu0  ;;  %v1138_v1 = vpop.f32.mrb[27].mxu1 }
 0x184   : > { %v2483_v2 = vpack.c.bf16 %v1655_v58, %v1654_v52  ;;  %v2515_v3 = vpack.c.bf16 %v1719_v59, %v1718_v53  ;;  %v1657_v4 = vadd.f32 %v3100_v55, %v978_v0  ;;  %v1721_v5 = vadd.f32 %v3100_v55, %v1138_v1 }
 0x186   : > { %2154 = vst [vmem:[%s3111_s9 + $0x60] sm:$0xff] %v2483_v2  ;;  %2186 = vst [vmem:[%s3111_s9 + $0x160] sm:$0xff] %v2515_v3  ;;  %v2484_v6 = vpack.c.bf16 %v1657_v4, %v1656_v62  ;;  %v2516_v7 = vpack.c.bf16 %v1721_v5, %v1720_v63 }
 0x188   : > { %2155 = vst [vmem:[%s3111_s9 + $0x68] sm:$0xff] %v2484_v6  ;;  %2187 = vst [vmem:[%s3111_s9 + $0x168] sm:$0xff] %v2516_v7  ;;  %v982_v8 = vpop.f32.mrb[28].mxu0  ;;  %v1142_v9 = vpop.f32.mrb[28].mxu1 }
 0x189   : > { %v1658_v10 = vadd.f32 %v3098_v54, %v982_v8  ;;  %v1722_v11 = vadd.f32 %v3098_v54, %v1142_v9  ;;  %v984_v12 = vpop.f32.mrb[29].mxu0  ;;  %v1144_v13 = vpop.f32.mrb[29].mxu1 }
 0x18a   : > { %v1659_v14 = vadd.f32 %v3100_v55, %v984_v12  ;;  %v1723_v15 = vadd.f32 %v3100_v55, %v1144_v13  ;;  %v986_v16 = vpop.f32.mrb[30].mxu0  ;;  %v1146_v17 = vpop.f32.mrb[30].mxu1 }
 0x18b   : > { %v1660_v18 = vadd.f32 %v3098_v54, %v986_v16  ;;  %v1724_v19 = vadd.f32 %v3098_v54, %v1146_v17  ;;  %v988_v20 = vpop.f32.mrb[31].mxu0  ;;  %v1148_v21 = vpop.f32.mrb[31].mxu1 }
 0x18c   : > { %v2485_v22 = vpack.c.bf16 %v1659_v14, %v1658_v10  ;;  %v2517_v23 = vpack.c.bf16 %v1723_v15, %v1722_v11  ;;  %v1661_v24 = vadd.f32 %v3100_v55, %v988_v20  ;;  %v1725_v25 = vadd.f32 %v3100_v55, %v1148_v21 }
 0x18e   : > { %2156 = vst [vmem:[%s3111_s9 + $0x70] sm:$0xff] %v2485_v22  ;;  %2188 = vst [vmem:[%s3111_s9 + $0x170] sm:$0xff] %v2517_v23  ;;  %v2486_v26 = vpack.c.bf16 %v1661_v24, %v1660_v18  ;;  %v2518_v27 = vpack.c.bf16 %v1725_v25, %v1724_v19 }
 0x190   : > { %2157 = vst [vmem:[%s3111_s9 + $0x78] sm:$0xff] %v2486_v26  ;;  %2189 = vst [vmem:[%s3111_s9 + $0x178] sm:$0xff] %v2518_v27  ;;  %v992_v28 = vpop.f32.mrb[32].mxu0  ;;  %v1152_v29 = vpop.f32.mrb[32].mxu1 }
 0x191   : > { %v1662_v30 = vadd.f32 %v3098_v54, %v992_v28  ;;  %v1726_v31 = vadd.f32 %v3098_v54, %v1152_v29  ;;  %v994_v32 = vpop.f32.mrb[33].mxu0  ;;  %v1154_v33 = vpop.f32.mrb[33].mxu1 }
 0x192   : > { %v1663_v34 = vadd.f32 %v3100_v55, %v994_v32  ;;  %v1727_v35 = vadd.f32 %v3100_v55, %v1154_v33  ;;  %v996_v36 = vpop.f32.mrb[34].mxu0  ;;  %v1156_v37 = vpop.f32.mrb[34].mxu1 }
 0x193   : > { %v1664_v38 = vadd.f32 %v3098_v54, %v996_v36  ;;  %v1728_v39 = vadd.f32 %v3098_v54, %v1156_v37  ;;  %v998_v40 = vpop.f32.mrb[35].mxu0  ;;  %v1158_v41 = vpop.f32.mrb[35].mxu1 }
 0x194   : > { %v2487_v42 = vpack.c.bf16 %v1663_v34, %v1662_v30  ;;  %v2519_v43 = vpack.c.bf16 %v1727_v35, %v1726_v31  ;;  %v1665_v44 = vadd.f32 %v3100_v55, %v998_v40  ;;  %v1729_v45 = vadd.f32 %v3100_v55, %v1158_v41 }
 0x196   : > { %2158 = vst [vmem:[%s3111_s9 + $0x80] sm:$0xff] %v2487_v42  ;;  %2190 = vst [vmem:[%s3111_s9 + $0x180] sm:$0xff] %v2519_v43  ;;  %v2488_v46 = vpack.c.bf16 %v1665_v44, %v1664_v38  ;;  %v2520_v47 = vpack.c.bf16 %v1729_v45, %v1728_v39 }
 0x198   : > { %2159 = vst [vmem:[%s3111_s9 + $0x88] sm:$0xff] %v2488_v46  ;;  %2191 = vst [vmem:[%s3111_s9 + $0x188] sm:$0xff] %v2520_v47  ;;  %v1002_v48 = vpop.f32.mrb[36].mxu0  ;;  %v1162_v49 = vpop.f32.mrb[36].mxu1 }
 0x199   : > { %v1666_v50 = vadd.f32 %v3098_v54, %v1002_v48  ;;  %v1730_v51 = vadd.f32 %v3098_v54, %v1162_v49  ;;  %v1004_v52 = vpop.f32.mrb[37].mxu0  ;;  %v1164_v53 = vpop.f32.mrb[37].mxu1 }
 0x19a   : > { %v1667_v56 = vadd.f32 %v3100_v55, %v1004_v52  ;;  %v1731_v57 = vadd.f32 %v3100_v55, %v1164_v53  ;;  %v1006_v58 = vpop.f32.mrb[38].mxu0  ;;  %v1166_v59 = vpop.f32.mrb[38].mxu1 }
 0x19b   : > { %v1668_v60 = vadd.f32 %v3098_v54, %v1006_v58  ;;  %v1732_v61 = vadd.f32 %v3098_v54, %v1166_v59  ;;  %v1008_v62 = vpop.f32.mrb[39].mxu0  ;;  %v1168_v63 = vpop.f32.mrb[39].mxu1 }
 0x19c   : > { %v2489_v0 = vpack.c.bf16 %v1667_v56, %v1666_v50  ;;  %v2521_v1 = vpack.c.bf16 %v1731_v57, %v1730_v51  ;;  %v1669_v2 = vadd.f32 %v3100_v55, %v1008_v62  ;;  %v1733_v3 = vadd.f32 %v3100_v55, %v1168_v63 }
 0x19e   : > { %2160 = vst [vmem:[%s3111_s9 + $0x90] sm:$0xff] %v2489_v0  ;;  %2192 = vst [vmem:[%s3111_s9 + $0x190] sm:$0xff] %v2521_v1  ;;  %v2490_v4 = vpack.c.bf16 %v1669_v2, %v1668_v60  ;;  %v2522_v5 = vpack.c.bf16 %v1733_v3, %v1732_v61 }
 0x1a0   : > { %2161 = vst [vmem:[%s3111_s9 + $0x98] sm:$0xff] %v2490_v4  ;;  %2193 = vst [vmem:[%s3111_s9 + $0x198] sm:$0xff] %v2522_v5  ;;  %v1012_v6 = vpop.f32.mrb[40].mxu0  ;;  %v1172_v7 = vpop.f32.mrb[40].mxu1 }
 0x1a1   : > { %v1670_v8 = vadd.f32 %v3098_v54, %v1012_v6  ;;  %v1734_v9 = vadd.f32 %v3098_v54, %v1172_v7  ;;  %v1014_v10 = vpop.f32.mrb[41].mxu0  ;;  %v1174_v11 = vpop.f32.mrb[41].mxu1 }
 0x1a2   : > { %v1671_v12 = vadd.f32 %v3100_v55, %v1014_v10  ;;  %v1735_v13 = vadd.f32 %v3100_v55, %v1174_v11  ;;  %v1016_v14 = vpop.f32.mrb[42].mxu0  ;;  %v1176_v15 = vpop.f32.mrb[42].mxu1 }
 0x1a3   : > { %v1672_v16 = vadd.f32 %v3098_v54, %v1016_v14  ;;  %v1736_v17 = vadd.f32 %v3098_v54, %v1176_v15  ;;  %v1018_v18 = vpop.f32.mrb[43].mxu0  ;;  %v1178_v19 = vpop.f32.mrb[43].mxu1 }
 0x1a4   : > { %v2491_v20 = vpack.c.bf16 %v1671_v12, %v1670_v8  ;;  %v2523_v21 = vpack.c.bf16 %v1735_v13, %v1734_v9  ;;  %v1673_v22 = vadd.f32 %v3100_v55, %v1018_v18  ;;  %v1737_v23 = vadd.f32 %v3100_v55, %v1178_v19 }
 0x1a6   : > { %2162 = vst [vmem:[%s3111_s9 + $0xa0] sm:$0xff] %v2491_v20  ;;  %2194 = vst [vmem:[%s3111_s9 + $0x1a0] sm:$0xff] %v2523_v21  ;;  %v2492_v24 = vpack.c.bf16 %v1673_v22, %v1672_v16  ;;  %v2524_v25 = vpack.c.bf16 %v1737_v23, %v1736_v17 }
 0x1a8   : > { %2163 = vst [vmem:[%s3111_s9 + $0xa8] sm:$0xff] %v2492_v24  ;;  %2195 = vst [vmem:[%s3111_s9 + $0x1a8] sm:$0xff] %v2524_v25  ;;  %v1022_v26 = vpop.f32.mrb[44].mxu0  ;;  %v1182_v27 = vpop.f32.mrb[44].mxu1 }
 0x1a9   : > { %v1674_v28 = vadd.f32 %v3098_v54, %v1022_v26  ;;  %v1738_v29 = vadd.f32 %v3098_v54, %v1182_v27  ;;  %v1024_v30 = vpop.f32.mrb[45].mxu0  ;;  %v1184_v31 = vpop.f32.mrb[45].mxu1 }
 0x1aa   : > { %v1675_v32 = vadd.f32 %v3100_v55, %v1024_v30  ;;  %v1739_v33 = vadd.f32 %v3100_v55, %v1184_v31  ;;  %v1026_v34 = vpop.f32.mrb[46].mxu0  ;;  %v1186_v35 = vpop.f32.mrb[46].mxu1 }
 0x1ab   : > { %v1676_v36 = vadd.f32 %v3098_v54, %v1026_v34  ;;  %v1740_v37 = vadd.f32 %v3098_v54, %v1186_v35  ;;  %v1028_v38 = vpop.f32.mrb[47].mxu0  ;;  %v1188_v39 = vpop.f32.mrb[47].mxu1 }
 0x1ac   : > { %v2493_v40 = vpack.c.bf16 %v1675_v32, %v1674_v28  ;;  %v2525_v41 = vpack.c.bf16 %v1739_v33, %v1738_v29  ;;  %v1677_v42 = vadd.f32 %v3100_v55, %v1028_v38  ;;  %v1741_v43 = vadd.f32 %v3100_v55, %v1188_v39 }
 0x1ae   : > { %2164 = vst [vmem:[%s3111_s9 + $0xb0] sm:$0xff] %v2493_v40  ;;  %2196 = vst [vmem:[%s3111_s9 + $0x1b0] sm:$0xff] %v2525_v41  ;;  %v2494_v44 = vpack.c.bf16 %v1677_v42, %v1676_v36  ;;  %v2526_v45 = vpack.c.bf16 %v1741_v43, %v1740_v37 }
 0x1b0   : > { %2165 = vst [vmem:[%s3111_s9 + $0xb8] sm:$0xff] %v2494_v44  ;;  %2197 = vst [vmem:[%s3111_s9 + $0x1b8] sm:$0xff] %v2526_v45  ;;  %v1032_v46 = vpop.f32.mrb[48].mxu0  ;;  %v1192_v47 = vpop.f32.mrb[48].mxu1 }
 0x1b1   : > { %v1678_v48 = vadd.f32 %v3098_v54, %v1032_v46  ;;  %v1742_v49 = vadd.f32 %v3098_v54, %v1192_v47  ;;  %v1034_v50 = vpop.f32.mrb[49].mxu0  ;;  %v1194_v51 = vpop.f32.mrb[49].mxu1 }
 0x1b2   : > { %v1679_v52 = vadd.f32 %v3100_v55, %v1034_v50  ;;  %v1743_v53 = vadd.f32 %v3100_v55, %v1194_v51  ;;  %v1036_v56 = vpop.f32.mrb[50].mxu0  ;;  %v1196_v57 = vpop.f32.mrb[50].mxu1 }
 0x1b3   : > { %v1680_v58 = vadd.f32 %v3098_v54, %v1036_v56  ;;  %v1744_v59 = vadd.f32 %v3098_v54, %v1196_v57  ;;  %v1038_v60 = vpop.f32.mrb[51].mxu0  ;;  %v1198_v61 = vpop.f32.mrb[51].mxu1 }
 0x1b4   : > { %v2495_v62 = vpack.c.bf16 %v1679_v52, %v1678_v48  ;;  %v2527_v63 = vpack.c.bf16 %v1743_v53, %v1742_v49  ;;  %v1681_v0 = vadd.f32 %v3100_v55, %v1038_v60  ;;  %v1745_v1 = vadd.f32 %v3100_v55, %v1198_v61 }
 0x1b6   : > { %2166 = vst [vmem:[%s3111_s9 + $0xc0] sm:$0xff] %v2495_v62  ;;  %2198 = vst [vmem:[%s3111_s9 + $0x1c0] sm:$0xff] %v2527_v63  ;;  %v2496_v2 = vpack.c.bf16 %v1681_v0, %v1680_v58  ;;  %v2528_v3 = vpack.c.bf16 %v1745_v1, %v1744_v59 }
 0x1b8   : > { %2167 = vst [vmem:[%s3111_s9 + $0xc8] sm:$0xff] %v2496_v2  ;;  %2199 = vst [vmem:[%s3111_s9 + $0x1c8] sm:$0xff] %v2528_v3  ;;  %v1042_v4 = vpop.f32.mrb[52].mxu0  ;;  %v1202_v5 = vpop.f32.mrb[52].mxu1 }
 0x1b9   : > { %v1682_v6 = vadd.f32 %v3098_v54, %v1042_v4  ;;  %v1746_v7 = vadd.f32 %v3098_v54, %v1202_v5  ;;  %v1044_v8 = vpop.f32.mrb[53].mxu0  ;;  %v1204_v9 = vpop.f32.mrb[53].mxu1 }
 0x1ba   : > { %v1683_v10 = vadd.f32 %v3100_v55, %v1044_v8  ;;  %v1747_v11 = vadd.f32 %v3100_v55, %v1204_v9  ;;  %v1046_v12 = vpop.f32.mrb[54].mxu0  ;;  %v1206_v13 = vpop.f32.mrb[54].mxu1 }
 0x1bb   : > { %v1684_v14 = vadd.f32 %v3098_v54, %v1046_v12  ;;  %v1748_v15 = vadd.f32 %v3098_v54, %v1206_v13  ;;  %v1048_v16 = vpop.f32.mrb[55].mxu0  ;;  %v1208_v17 = vpop.f32.mrb[55].mxu1 }
 0x1bc   : > { %v2497_v18 = vpack.c.bf16 %v1683_v10, %v1682_v6  ;;  %v2529_v19 = vpack.c.bf16 %v1747_v11, %v1746_v7  ;;  %v1685_v20 = vadd.f32 %v3100_v55, %v1048_v16  ;;  %v1749_v21 = vadd.f32 %v3100_v55, %v1208_v17 }
 0x1be   : > { %2168 = vst [vmem:[%s3111_s9 + $0xd0] sm:$0xff] %v2497_v18  ;;  %2200 = vst [vmem:[%s3111_s9 + $0x1d0] sm:$0xff] %v2529_v19  ;;  %v2498_v22 = vpack.c.bf16 %v1685_v20, %v1684_v14  ;;  %v2530_v23 = vpack.c.bf16 %v1749_v21, %v1748_v15 }
 0x1c0   : > { %2169 = vst [vmem:[%s3111_s9 + $0xd8] sm:$0xff] %v2498_v22  ;;  %2201 = vst [vmem:[%s3111_s9 + $0x1d8] sm:$0xff] %v2530_v23  ;;  %v1052_v24 = vpop.f32.mrb[56].mxu0  ;;  %v1212_v25 = vpop.f32.mrb[56].mxu1 }
 0x1c1   : > { %v1686_v26 = vadd.f32 %v3098_v54, %v1052_v24  ;;  %v1750_v27 = vadd.f32 %v3098_v54, %v1212_v25  ;;  %v1054_v28 = vpop.f32.mrb[57].mxu0  ;;  %v1214_v29 = vpop.f32.mrb[57].mxu1 }
 0x1c2   : > { %v1687_v30 = vadd.f32 %v3100_v55, %v1054_v28  ;;  %v1751_v31 = vadd.f32 %v3100_v55, %v1214_v29  ;;  %v1056_v32 = vpop.f32.mrb[58].mxu0  ;;  %v1216_v33 = vpop.f32.mrb[58].mxu1 }
 0x1c3   : > { %v1688_v34 = vadd.f32 %v3098_v54, %v1056_v32  ;;  %v1752_v35 = vadd.f32 %v3098_v54, %v1216_v33  ;;  %v1058_v36 = vpop.f32.mrb[59].mxu0  ;;  %v1218_v37 = vpop.f32.mrb[59].mxu1 }
 0x1c4   : > { %v2499_v38 = vpack.c.bf16 %v1687_v30, %v1686_v26  ;;  %v2531_v39 = vpack.c.bf16 %v1751_v31, %v1750_v27  ;;  %v1689_v40 = vadd.f32 %v3100_v55, %v1058_v36  ;;  %v1753_v41 = vadd.f32 %v3100_v55, %v1218_v37 }
 0x1c6   : > { %2170 = vst [vmem:[%s3111_s9 + $0xe0] sm:$0xff] %v2499_v38  ;;  %2202 = vst [vmem:[%s3111_s9 + $0x1e0] sm:$0xff] %v2531_v39  ;;  %v2500_v42 = vpack.c.bf16 %v1689_v40, %v1688_v34  ;;  %v2532_v43 = vpack.c.bf16 %v1753_v41, %v1752_v35 }
 0x1c8   : > { %2171 = vst [vmem:[%s3111_s9 + $0xe8] sm:$0xff] %v2500_v42  ;;  %2203 = vst [vmem:[%s3111_s9 + $0x1e8] sm:$0xff] %v2532_v43  ;;  %v1062_v44 = vpop.f32.mrb[60].mxu0  ;;  %v1222_v45 = vpop.f32.mrb[60].mxu1 }
 0x1c9   : > { %v1690_v46 = vadd.f32 %v3098_v54, %v1062_v44  ;;  %v1754_v47 = vadd.f32 %v3098_v54, %v1222_v45  ;;  %v1064_v48 = vpop.f32.mrb[61].mxu0  ;;  %v1224_v49 = vpop.f32.mrb[61].mxu1 }
 0x1ca   : > { %v1691_v50 = vadd.f32 %v3100_v55, %v1064_v48  ;;  %v1755_v51 = vadd.f32 %v3100_v55, %v1224_v49  ;;  %v1066_v52 = vpop.f32.mrb[62].mxu0  ;;  %v1226_v53 = vpop.f32.mrb[62].mxu1 }
 0x1cb   : > { %v1692_v56 = vadd.f32 %v3098_v54, %v1066_v52  ;;  %v1756_v57 = vadd.f32 %v3098_v54, %v1226_v53  ;;  %v1068_v58 = vpop.f32.mrb[63].mxu0  ;;  %v1228_v59 = vpop.f32.mrb[63].mxu1 }
 0x1cc   : > { %v2501_v60 = vpack.c.bf16 %v1691_v50, %v1690_v46  ;;  %v2533_v61 = vpack.c.bf16 %v1755_v51, %v1754_v47  ;;  %v1693_v62 = vadd.f32 %v3100_v55, %v1068_v58  ;;  %v1757_v63 = vadd.f32 %v3100_v55, %v1228_v59 }
 0x1ce   : > { %2172 = vst [vmem:[%s3111_s9 + $0xf0] sm:$0xff] %v2501_v60  ;;  %2204 = vst [vmem:[%s3111_s9 + $0x1f0] sm:$0xff] %v2533_v61  ;;  %v2502_v54 = vpack.c.bf16 %v1693_v62, %v1692_v56  ;;  %v2534_v0 = vpack.c.bf16 %v1757_v63, %v1756_v57 }
 0x1d0   : > { %2173 = vst [vmem:[%s3111_s9 + $0xf8] sm:$0xff] %v2502_v54  ;;  %2205 = vst [vmem:[%s3111_s9 + $0x1f8] sm:$0xff] %v2534_v0 }
 0x1d1   : > { %2760 = shalt.err (!%p2757_p5)
}
 0x1d2   : > { %s2761_s29 = scalar_lea.hbm %s3298_s15, 8192  ;;  %s2765_s20 = scalar_lea.hbm %s3356_s3, 16384 }
 0x1d3   : > { %p2762_p9 = scmp.ne.s32.totalorder %s3298_s15, %s2761_s29  ;;  %p2766_p3 = scmp.lt.u32.totalorder %s3298_s15, %s3356_s3 }
 0x1d4   : > { %p2767_p7 = scmp.lt.u32.totalorder %s2765_s20, %s2761_s29  ;;  %p2769_p4 = scmp.lt.u32.totalorder %s2761_s29, %s3298_s15 }
 0x1d5   : > { %p2763_p1 = pnand %p2762_p9, %p2961_p10 }
 0x1d6   : > { %p2768_p13 = por %p2767_p7, %p2766_p3 }
 0x1d7   : > { %p2764_p2 = pneg %p2763_p1 }
 0x1d8   : > { %p2770_p6 = por %p2769_p4, %p2768_p13 }
 0x1da   : > { %p2771_p8 = pnand %p2770_p6, %p2764_p2 }
 0x1dc   : > { %2774 = shalt.err (!%p2771_p8)
}
 0x1dd   : > { %s2843_s9 = smov 128   ;;  %s2844_s10 = smov 8  }
 0x1de   : > { %2559 = dma.vmem_to_hbm [thread:$0]  (%p2961_p10), %s3300_s11, 8192, %s3298_s15, %s2207_s7, %s2843_s9, %s2843_s9, %s2844_s10  }
 0x1df PF: > { %s2238_s18 = sand.u32 1, %s2813_s12   ;;  %p3374_p12 = scmp.ne.s32.totalorder %s3364_s23, 0 }
 0x1e0   : > { %p3375_p11 = scmp.ge.s32.totalorder %s2833_s17, 2  ;;  %s2239_s26 = scalar_lea.sflag [#allocation5], %s2238_s18 }
 0x1e2   : > { %p2570_p0 = pnand %p3375_p11, %p3374_p12 }
 0x1e4   : > { %2808 = dma.done.wait (!%p2570_p0), %s2239_s26, 8192  }
 0x1e5   : > { %2810 = vsyncadd (!%p2570_p0), %s2239_s26, 4294959104  ;;  %s20_s17 = sadd.s32 1, %s2833_s17   ;;  %s3376_s12 = smov %s2817_s13 }
 0x1e6   : > { %p17_p5 = scmp.ge.s32.totalorder %s20_s17, 4   ;;  %s3377_s13 = smov %s2821_s14 }
 0x1e7   : > { %s3378_s14 = smov %s2970_s5  ;;  %s3379_s15 = smov %s2829_s16 }
 0x1e8   : > { %s3380_s16 = smov %s3382_s28  ;;  %19 = sbr.rel (!%p17_p5) target bundleno = 7 (0x7), region = 93 }
 0x1ef   :  { %2244 = vsyncpa [#allocation4], 1 }
 0x1f0   :  { %2246 = vsyncpa [#allocation4 + $0x1], 1 }
 0x1f1   :  { %2247 = vsyncpa [#allocation7], 1 }
 0x1f2   :  { %2248 = vsyncpa [#allocation5], 1 }
 0x1f3   :  { %2250 = vsyncpa [#allocation5 + $0x1], 1 }

</bundles_post_ra>
